<compile_context>
chip_gen: v6e
topology: v6e:2x2x1
jax: 0.10.0
libtpu: 0.0.40
codegen_flags: <defaults>
</compile_context>

<pallas_src>
import jax
import jax.numpy as jnp
from jax.experimental import pallas as pl
from jax.experimental.pallas import tpu as pltpu


# ----------------------------------------------------------------------------- kernel
def _fused_resnet_kernel(x_ref, w_ref, g_ref, b_ref, sel_ref, exp_ref, o_ref, slab_ref):
    """Fused SimpleResNet forward.

    x_ref   : (N, H, W*C)        lane-dense NHWC input (f32)
    w_ref   : (4, 3, W*C, W*C)   banded row-conv weights (stage, ky, W*Cin, W*Cout)
    g_ref   : (4, C)             BN gammas (conv bias dropped: cancelled by BN mean)
    b_ref   : (4, C)             BN betas
    sel_ref : (W*C, C)           lane->channel selector (0/1), for BN reductions
    exp_ref : (C, W*C)           channel->lane expander  (0/1), for BN scale/shift
    o_ref   : (N*H, W*C)         lane-dense output
    slab_ref: (N, H+2, W*C)      VMEM scratch, H-padded activation slab
    """
    N, H, WC = x_ref.shape
    C = g_ref.shape[-1]
    Wd = WC // C
    NH = N * H
    inv_cnt = 1.0 / float(N * H * Wd)

    # Zero once: only the two H-padding rows matter, interior is overwritten per stage.
    slab_ref[...] = jnp.zeros_like(slab_ref)

    sel = sel_ref[...]          # (WC, C)
    exp = exp_ref[...]          # (C, WC)

    def conv_bn(act_nhw, stage):
        """3x3 conv (stride 1, pad 1) + training-mode BN, lane-dense in and out."""
        # Current activation -> slab interior (rows 1..H); rows 0 and H+1 stay zero.
        slab_ref[:, 1:H + 1, :] = act_nhw

        # Row-conv as 3 accumulated matmuls: K = W*Cin, Nout = W*Cout (both 128 here).
        acc = jnp.zeros((NH, WC), jnp.float32)
        for ky in range(3):
            lhs = slab_ref[:, ky:ky + H, :].reshape(NH, WC)       # cheap leading-dim merge
            acc = acc + jnp.dot(lhs, w_ref[stage, ky],
                                preferred_element_type=jnp.float32)

        # BatchNorm (training mode): per-channel stats over (N, H, W).
        csum = jnp.sum(acc, axis=0, keepdims=True)                # (1, WC) sublane reduce
        csq = jnp.sum(acc * acc, axis=0, keepdims=True)           # (1, WC)
        mean = jnp.dot(csum, sel, preferred_element_type=jnp.float32) * inv_cnt   # (1, C)
        ex2 = jnp.dot(csq, sel, preferred_element_type=jnp.float32) * inv_cnt     # (1, C)
        var = ex2 - mean * mean

        gamma = g_ref[stage:stage + 1, :]                         # (1, C)
        beta = b_ref[stage:stage + 1, :]
        scale = gamma * jax.lax.rsqrt(var + 1e-5)                 # fused BN scale
        shift = beta - mean * scale                               # fused BN shift

        scale_l = jnp.dot(scale, exp, preferred_element_type=jnp.float32)   # (1, WC)
        shift_l = jnp.dot(shift, exp, preferred_element_type=jnp.float32)   # (1, WC)
        return acc * scale_l + shift_l                            # (NH, WC)

    x = x_ref[...]                                                # (N, H, WC)
    res1 = x.reshape(NH, WC)                                      # block-1 residual

    # ---- BasicBlock 1: conv1->bn1->relu, conv2->bn2 (+x) ->relu ----
    h = jnp.maximum(conv_bn(x, 0), 0.0)
    b1 = jnp.maximum(conv_bn(h.reshape(N, H, WC), 1) + res1, 0.0)

    # ---- BasicBlock 2 ----
    h = jnp.maximum(conv_bn(b1.reshape(N, H, WC), 2), 0.0)
    out = jnp.maximum(conv_bn(h.reshape(N, H, WC), 3) + b1, 0.0)

    o_ref[...] = out


# ----------------------------------------------------------------------------- wrapper
def _make_row_conv_weights(w_hwio, W):
    """(3, 3, Cin, Cout) conv weight -> (3, W*Cin, W*Cout) banded row-conv matrices.

    Wk[ky][wp*Cin + ci, w*Cout + co] = w_hwio[ky, kx, ci, co] with wp = w + kx - 1,
    out-of-range taps dropped (== zero padding of width 1 in W).
    """
    kh, kw, Cin, Cout = w_hwio.shape
    eye = jnp.eye(W, dtype=w_hwio.dtype)
    mats = []
    for ky in range(kh):
        m = jnp.zeros((W * Cin, W * Cout), w_hwio.dtype)
        for kx in range(kw):
            blk = jnp.kron(eye, w_hwio[ky, kx])                   # (W*Cin, W*Cout)
            shift = (kx - 1) * Cin                                # conv padding = 1
            if shift > 0:
                blk = jnp.pad(blk[:-shift, :], ((shift, 0), (0, 0)))
            elif shift < 0:
                blk = jnp.pad(blk[-shift:, :], ((0, -shift), (0, 0)))
            m = m + blk
        mats.append(m)
    return jnp.stack(mats)                                        # (3, W*Cin, W*Cout)


@jax.jit
def simple_resnet_forward(params, x_nchw):
    """SimpleResNet.forward. x_nchw: (N, C, H, W) float32 -> (N, C, H, W)."""
    N, C, H, W = x_nchw.shape
    x_lane = jnp.transpose(x_nchw, (0, 2, 3, 1)).reshape(N, H, W * C)   # lane-dense NHWC

    def hwio(w_oihw):                                             # PyTorch OIHW -> HWIO
        return jnp.transpose(w_oihw, (2, 3, 1, 0))

    w_all = jnp.stack([
        _make_row_conv_weights(hwio(params["layer1"]["w1"]), W),
        _make_row_conv_weights(hwio(params["layer1"]["w2"]), W),
        _make_row_conv_weights(hwio(params["layer2"]["w1"]), W),
        _make_row_conv_weights(hwio(params["layer2"]["w2"]), W),
    ])                                                            # (4, 3, W*C, W*C)
    g_all = jnp.stack([params["layer1"]["g1"], params["layer1"]["g2"],
                       params["layer2"]["g1"], params["layer2"]["g2"]])   # (4, C)
    b_all = jnp.stack([params["layer1"]["be1"], params["layer1"]["be2"],
                       params["layer2"]["be1"], params["layer2"]["be2"]])  # (4, C)

    sel = jnp.tile(jnp.eye(C, dtype=jnp.float32), (W, 1))         # (W*C, C)
    exp = sel.T                                                   # (C, W*C)

    vspec = pl.BlockSpec(memory_space=pltpu.MemorySpace.VMEM)
    out_flat = pl.pallas_call(
        _fused_resnet_kernel,
        out_shape=jax.ShapeDtypeStruct((N * H, W * C), jnp.float32),
        in_specs=[vspec] * 6,
        out_specs=vspec,
        scratch_shapes=[pltpu.VMEM((N, H + 2, W * C), jnp.float32)],
    )(x_lane, w_all, g_all, b_all, sel, exp)

    out = out_flat.reshape(N, H, W, C)
    return jnp.transpose(out, (0, 3, 1, 2))                       # NHWC -> NCHW


# ----------------------------------------------------------------------------- params
def _init_block(key, c_in, c_out):
    """Conv weights in PyTorch OIHW layout; BN weight=1, bias=0 (nn.BatchNorm2d default).
    Conv bias omitted: it is mathematically cancelled by training-mode BN mean."""
    k1, k2 = jax.random.split(key)
    s1 = 1.0 / jnp.sqrt(jnp.float32(c_in * 9))
    s2 = 1.0 / jnp.sqrt(jnp.float32(c_out * 9))
    return {
        "w1": jax.random.normal(k1, (c_out, c_in, 3, 3), jnp.float32) * s1,
        "g1": jnp.ones((c_out,), jnp.float32),
        "be1": jnp.zeros((c_out,), jnp.float32),
        "w2": jax.random.normal(k2, (c_out, c_out, 3, 3), jnp.float32) * s2,
        "g2": jnp.ones((c_out,), jnp.float32),
        "be2": jnp.zeros((c_out,), jnp.float32),
    }


def init_simple_resnet_params(key, input_channels, output_channels):
    assert input_channels == 16 and output_channels == 16, \
        "BasicBlock residual add requires in_channels == out_channels == 16"
    k1, k2 = jax.random.split(key)
    return {"layer1": _init_block(k1, input_channels, 16),
            "layer2": _init_block(k2, 16, output_channels)}


# ----------------------------------------------------------------------------- reference
def _reference_forward(params, x_nchw):
    """Pure-JAX (lax.conv) reference mirroring the PyTorch module in training mode."""
    def conv(h, w):
        return jax.lax.conv_general_dilated(
            h, w, (1, 1), ((1, 1), (1, 1)),
            dimension_numbers=("NCHW", "OIHW", "NCHW"))

    def bn(h, g, b):
        mean = jnp.mean(h, axis=(0, 2, 3), keepdims=True)
        var = jnp.mean((h - mean) ** 2, axis=(0, 2, 3), keepdims=True)
        return ((h - mean) * jax.lax.rsqrt(var + 1e-5)) * g.reshape(1, -1, 1, 1) \
            + b.reshape(1, -1, 1, 1)

    def block(x, p):
        out = jax.nn.relu(bn(conv(x, p["w1"]), p["g1"], p["be1"]))
        out = bn(conv(out, p["w2"]), p["g2"], p["be2"]) + x
        return jax.nn.relu(out)

    x = block(x_nchw, params["layer1"])
    x = block(x, params["layer2"])
    return x


# ----------------------------------------------------------------------------- main
if __name__ == "__main__":
    key = jax.random.PRNGKey(0)
    k_param, k_x = jax.random.split(key)

    # C = 16 is required by the module's residual adds; W*C = 128 gives lane-dense tiles.
    N, C, H, W = 2, 16, 8, 8
    params = init_simple_resnet_params(k_param, C, C)
    x = jax.random.normal(k_x, (N, C, H, W), jnp.float32)

    out = simple_resnet_forward(params, x)
    jax.block_until_ready(out)
    assert out.shape == (N, C, H, W)

    ref = _reference_forward(params, x)
    err = float(jnp.max(jnp.abs(out - ref)))
    assert err < 2e-3, f"mismatch vs reference: {err}"

    print("KERNEL_OK")
</pallas_src>

<mosaic_0001>
module attributes {stable_mosaic.version = 11 : i64} {
  func.func @_fused_resnet_kernel(%arg0: memref<2x8x128xf32, #tpu.memory_space<vmem>>, %arg1: memref<4x3x128x128xf32, #tpu.memory_space<vmem>>, %arg2: memref<4x16xf32, #tpu.memory_space<vmem>>, %arg3: memref<4x16xf32, #tpu.memory_space<vmem>>, %arg4: memref<128x16xf32, #tpu.memory_space<vmem>>, %arg5: memref<16x128xf32, #tpu.memory_space<vmem>>, %arg6: memref<16x128xf32, #tpu.memory_space<vmem>>, %arg7: memref<2x10x128xf32, #tpu.memory_space<vmem>>) attributes {dimension_semantics = [], scalar_prefetch = 0 : i64, scratch_operands = 1 : i64, tpu.core_type = #tpu.core_type<tc>} {
    %cst = arith.constant 0.000000e+00 : f32
    %0 = vector.broadcast %cst : f32 to vector<2x10x128xf32>
    %c0 = arith.constant 0 : index
    %c0_0 = arith.constant 0 : index
    %c0_1 = arith.constant 0 : index
    %1 = vector.load %arg7[%c0, %c0_0, %c0_1] : memref<2x10x128xf32, #tpu.memory_space<vmem>>, vector<2x10x128xf32>
    tpu.vector_store %arg7[%c0, %c0_0, %c0_1], %0 {strides = array<i32>} : memref<2x10x128xf32, #tpu.memory_space<vmem>>, vector<2x10x128xf32>,
    %c0_2 = arith.constant 0 : index
    %c0_3 = arith.constant 0 : index
    %2 = vector.load %arg4[%c0_2, %c0_3] : memref<128x16xf32, #tpu.memory_space<vmem>>, vector<128x16xf32>
    %c0_4 = arith.constant 0 : index
    %c0_5 = arith.constant 0 : index
    %3 = vector.load %arg5[%c0_4, %c0_5] : memref<16x128xf32, #tpu.memory_space<vmem>>, vector<16x128xf32>
    %c0_6 = arith.constant 0 : index
    %c0_7 = arith.constant 0 : index
    %c0_8 = arith.constant 0 : index
    %4 = vector.load %arg0[%c0_6, %c0_7, %c0_8] : memref<2x8x128xf32, #tpu.memory_space<vmem>>, vector<2x8x128xf32>
    %5 = vector.shape_cast %4 : vector<2x8x128xf32> to vector<16x128xf32>
    %c0_9 = arith.constant 0 : index
    %c1 = arith.constant 1 : index
    %c0_10 = arith.constant 0 : index
    %6 = vector.load %arg7[%c0_9, %c1, %c0_10] : memref<2x10x128xf32, #tpu.memory_space<vmem>>, vector<2x8x128xf32>
    tpu.vector_store %arg7[%c0_9, %c1, %c0_10], %4 {strides = array<i32>} : memref<2x10x128xf32, #tpu.memory_space<vmem>>, vector<2x8x128xf32>,
    %cst_11 = arith.constant 0.000000e+00 : f32
    %7 = vector.broadcast %cst_11 : f32 to vector<16x128xf32>
    %c0_12 = arith.constant 0 : index
    %c0_13 = arith.constant 0 : index
    %c0_14 = arith.constant 0 : index
    %8 = vector.load %arg7[%c0_12, %c0_13, %c0_14] : memref<2x10x128xf32, #tpu.memory_space<vmem>>, vector<2x8x128xf32>
    %9 = vector.shape_cast %8 : vector<2x8x128xf32> to vector<16x128xf32>
    %c0_15 = arith.constant 0 : index
    %c0_16 = arith.constant 0 : index
    %c0_17 = arith.constant 0 : index
    %c0_18 = arith.constant 0 : index
    %10 = vector.load %arg1[%c0_15, %c0_16, %c0_17, %c0_18] : memref<4x3x128x128xf32, #tpu.memory_space<vmem>>, vector<1x1x128x128xf32>
    %11 = vector.shape_cast %10 : vector<1x1x128x128xf32> to vector<128x128xf32>
    %cst_19 = arith.constant dense<0.000000e+00> : vector<16x128xf32>
    %12 = tpu.matmul %9, %11, %cst_19 {dimension_numbers = #tpu.dot_dimension_numbers<[1], [0], [0], [1], [0, 0, 1, 1], [], []>} : vector<16x128xf32>, vector<128x128xf32>, vector<16x128xf32> -> vector<16x128xf32>
    %13 = arith.addf %7, %12 : vector<16x128xf32>
    %c0_20 = arith.constant 0 : index
    %c1_21 = arith.constant 1 : index
    %c0_22 = arith.constant 0 : index
    %14 = vector.load %arg7[%c0_20, %c1_21, %c0_22] : memref<2x10x128xf32, #tpu.memory_space<vmem>>, vector<2x8x128xf32>
    %15 = vector.shape_cast %14 : vector<2x8x128xf32> to vector<16x128xf32>
    %c0_23 = arith.constant 0 : index
    %c1_24 = arith.constant 1 : index
    %c0_25 = arith.constant 0 : index
    %c0_26 = arith.constant 0 : index
    %16 = vector.load %arg1[%c0_23, %c1_24, %c0_25, %c0_26] : memref<4x3x128x128xf32, #tpu.memory_space<vmem>>, vector<1x1x128x128xf32>
    %17 = vector.shape_cast %16 : vector<1x1x128x128xf32> to vector<128x128xf32>
    %cst_27 = arith.constant dense<0.000000e+00> : vector<16x128xf32>
    %18 = tpu.matmul %15, %17, %cst_27 {dimension_numbers = #tpu.dot_dimension_numbers<[1], [0], [0], [1], [0, 0, 1, 1], [], []>} : vector<16x128xf32>, vector<128x128xf32>, vector<16x128xf32> -> vector<16x128xf32>
    %19 = arith.addf %13, %18 : vector<16x128xf32>
    %c0_28 = arith.constant 0 : index
    %c2 = arith.constant 2 : index
    %c0_29 = arith.constant 0 : index
    %20 = vector.load %arg7[%c0_28, %c2, %c0_29] : memref<2x10x128xf32, #tpu.memory_space<vmem>>, vector<2x8x128xf32>
    %21 = vector.shape_cast %20 : vector<2x8x128xf32> to vector<16x128xf32>
    %c0_30 = arith.constant 0 : index
    %c2_31 = arith.constant 2 : index
    %c0_32 = arith.constant 0 : index
    %c0_33 = arith.constant 0 : index
    %22 = vector.load %arg1[%c0_30, %c2_31, %c0_32, %c0_33] : memref<4x3x128x128xf32, #tpu.memory_space<vmem>>, vector<1x1x128x128xf32>
    %23 = vector.shape_cast %22 : vector<1x1x128x128xf32> to vector<128x128xf32>
    %cst_34 = arith.constant dense<0.000000e+00> : vector<16x128xf32>
    %24 = tpu.matmul %21, %23, %cst_34 {dimension_numbers = #tpu.dot_dimension_numbers<[1], [0], [0], [1], [0, 0, 1, 1], [], []>} : vector<16x128xf32>, vector<128x128xf32>, vector<16x128xf32> -> vector<16x128xf32>
    %25 = arith.addf %19, %24 : vector<16x128xf32>
    %cst_35 = arith.constant dense<0.000000e+00> : vector<128xf32>
    %26 = vector.multi_reduction <add>, %25, %cst_35 [0] : vector<16x128xf32> to vector<128xf32>
    %27 = vector.shape_cast %26 : vector<128xf32> to vector<1x128xf32>
    %28 = arith.mulf %25, %25 : vector<16x128xf32>
    %cst_36 = arith.constant dense<0.000000e+00> : vector<128xf32>
    %29 = vector.multi_reduction <add>, %28, %cst_36 [0] : vector<16x128xf32> to vector<128xf32>
    %30 = vector.shape_cast %29 : vector<128xf32> to vector<1x128xf32>
    %cst_37 = arith.constant dense<0.000000e+00> : vector<1x16xf32>
    %31 = tpu.matmul %27, %2, %cst_37 {dimension_numbers = #tpu.dot_dimension_numbers<[1], [0], [0], [1], [0, 0, 1, 1], [], []>} : vector<1x128xf32>, vector<128x16xf32>, vector<1x16xf32> -> vector<1x16xf32>
    %cst_38 = arith.constant 7.812500e-03 : f32
    %32 = vector.broadcast %cst_38 : f32 to vector<1x16xf32>
    %33 = arith.mulf %31, %32 : vector<1x16xf32>
    %cst_39 = arith.constant dense<0.000000e+00> : vector<1x16xf32>
    %34 = tpu.matmul %30, %2, %cst_39 {dimension_numbers = #tpu.dot_dimension_numbers<[1], [0], [0], [1], [0, 0, 1, 1], [], []>} : vector<1x128xf32>, vector<128x16xf32>, vector<1x16xf32> -> vector<1x16xf32>
    %cst_40 = arith.constant 7.812500e-03 : f32
    %35 = vector.broadcast %cst_40 : f32 to vector<1x16xf32>
    %36 = arith.mulf %34, %35 : vector<1x16xf32>
    %37 = arith.mulf %33, %33 : vector<1x16xf32>
    %38 = arith.subf %36, %37 : vector<1x16xf32>
    %c0_41 = arith.constant 0 : index
    %c0_42 = arith.constant 0 : index
    %39 = vector.load %arg2[%c0_41, %c0_42] : memref<4x16xf32, #tpu.memory_space<vmem>>, vector<1x16xf32>
    %c0_43 = arith.constant 0 : index
    %c0_44 = arith.constant 0 : index
    %40 = vector.load %arg3[%c0_43, %c0_44] : memref<4x16xf32, #tpu.memory_space<vmem>>, vector<1x16xf32>
    %cst_45 = arith.constant 9.99999974E-6 : f32
    %41 = vector.broadcast %cst_45 : f32 to vector<1x16xf32>
    %42 = arith.addf %38, %41 : vector<1x16xf32>
    %43 = math.rsqrt %42 : vector<1x16xf32>
    %44 = arith.mulf %39, %43 : vector<1x16xf32>
    %45 = arith.mulf %33, %44 : vector<1x16xf32>
    %46 = arith.subf %40, %45 : vector<1x16xf32>
    %cst_46 = arith.constant dense<0.000000e+00> : vector<1x128xf32>
    %47 = tpu.matmul %44, %3, %cst_46 {dimension_numbers = #tpu.dot_dimension_numbers<[1], [0], [0], [1], [0, 0, 1, 1], [], []>} : vector<1x16xf32>, vector<16x128xf32>, vector<1x128xf32> -> vector<1x128xf32>
    %cst_47 = arith.constant dense<0.000000e+00> : vector<1x128xf32>
    %48 = tpu.matmul %46, %3, %cst_47 {dimension_numbers = #tpu.dot_dimension_numbers<[1], [0], [0], [1], [0, 0, 1, 1], [], []>} : vector<1x16xf32>, vector<16x128xf32>, vector<1x128xf32> -> vector<1x128xf32>
    %49 = vector.broadcast %47 : vector<1x128xf32> to vector<16x128xf32>
    %50 = arith.mulf %25, %49 : vector<16x128xf32>
    %51 = vector.broadcast %48 : vector<1x128xf32> to vector<16x128xf32>
    %52 = arith.addf %50, %51 : vector<16x128xf32>
    %cst_48 = arith.constant 0.000000e+00 : f32
    %53 = vector.broadcast %cst_48 : f32 to vector<16x128xf32>
    %54 = arith.maximumf %52, %53 : vector<16x128xf32>
    %55 = vector.shape_cast %54 : vector<16x128xf32> to vector<2x8x128xf32>
    %c0_49 = arith.constant 0 : index
    %c1_50 = arith.constant 1 : index
    %c0_51 = arith.constant 0 : index
    %56 = vector.load %arg7[%c0_49, %c1_50, %c0_51] : memref<2x10x128xf32, #tpu.memory_space<vmem>>, vector<2x8x128xf32>
    tpu.vector_store %arg7[%c0_49, %c1_50, %c0_51], %55 {strides = array<i32>} : memref<2x10x128xf32, #tpu.memory_space<vmem>>, vector<2x8x128xf32>,
    %cst_52 = arith.constant 0.000000e+00 : f32
    %57 = vector.broadcast %cst_52 : f32 to vector<16x128xf32>
    %c0_53 = arith.constant 0 : index
    %c0_54 = arith.constant 0 : index
    %c0_55 = arith.constant 0 : index
    %58 = vector.load %arg7[%c0_53, %c0_54, %c0_55] : memref<2x10x128xf32, #tpu.memory_space<vmem>>, vector<2x8x128xf32>
    %59 = vector.shape_cast %58 : vector<2x8x128xf32> to vector<16x128xf32>
    %c1_56 = arith.constant 1 : index
    %c0_57 = arith.constant 0 : index
    %c0_58 = arith.constant 0 : index
    %c0_59 = arith.constant 0 : index
    %60 = vector.load %arg1[%c1_56, %c0_57, %c0_58, %c0_59] : memref<4x3x128x128xf32, #tpu.memory_space<vmem>>, vector<1x1x128x128xf32>
    %61 = vector.shape_cast %60 : vector<1x1x128x128xf32> to vector<128x128xf32>
    %cst_60 = arith.constant dense<0.000000e+00> : vector<16x128xf32>
    %62 = tpu.matmul %59, %61, %cst_60 {dimension_numbers = #tpu.dot_dimension_numbers<[1], [0], [0], [1], [0, 0, 1, 1], [], []>} : vector<16x128xf32>, vector<128x128xf32>, vector<16x128xf32> -> vector<16x128xf32>
    %63 = arith.addf %57, %62 : vector<16x128xf32>
    %c0_61 = arith.constant 0 : index
    %c1_62 = arith.constant 1 : index
    %c0_63 = arith.constant 0 : index
    %64 = vector.load %arg7[%c0_61, %c1_62, %c0_63] : memref<2x10x128xf32, #tpu.memory_space<vmem>>, vector<2x8x128xf32>
    %65 = vector.shape_cast %64 : vector<2x8x128xf32> to vector<16x128xf32>
    %c1_64 = arith.constant 1 : index
    %c1_65 = arith.constant 1 : index
    %c0_66 = arith.constant 0 : index
    %c0_67 = arith.constant 0 : index
    %66 = vector.load %arg1[%c1_64, %c1_65, %c0_66, %c0_67] : memref<4x3x128x128xf32, #tpu.memory_space<vmem>>, vector<1x1x128x128xf32>
    %67 = vector.shape_cast %66 : vector<1x1x128x128xf32> to vector<128x128xf32>
    %cst_68 = arith.constant dense<0.000000e+00> : vector<16x128xf32>
    %68 = tpu.matmul %65, %67, %cst_68 {dimension_numbers = #tpu.dot_dimension_numbers<[1], [0], [0], [1], [0, 0, 1, 1], [], []>} : vector<16x128xf32>, vector<128x128xf32>, vector<16x128xf32> -> vector<16x128xf32>
    %69 = arith.addf %63, %68 : vector<16x128xf32>
    %c0_69 = arith.constant 0 : index
    %c2_70 = arith.constant 2 : index
    %c0_71 = arith.constant 0 : index
    %70 = vector.load %arg7[%c0_69, %c2_70, %c0_71] : memref<2x10x128xf32, #tpu.memory_space<vmem>>, vector<2x8x128xf32>
    %71 = vector.shape_cast %70 : vector<2x8x128xf32> to vector<16x128xf32>
    %c1_72 = arith.constant 1 : index
    %c2_73 = arith.constant 2 : index
    %c0_74 = arith.constant 0 : index
    %c0_75 = arith.constant 0 : index
    %72 = vector.load %arg1[%c1_72, %c2_73, %c0_74, %c0_75] : memref<4x3x128x128xf32, #tpu.memory_space<vmem>>, vector<1x1x128x128xf32>
    %73 = vector.shape_cast %72 : vector<1x1x128x128xf32> to vector<128x128xf32>
    %cst_76 = arith.constant dense<0.000000e+00> : vector<16x128xf32>
    %74 = tpu.matmul %71, %73, %cst_76 {dimension_numbers = #tpu.dot_dimension_numbers<[1], [0], [0], [1], [0, 0, 1, 1], [], []>} : vector<16x128xf32>, vector<128x128xf32>, vector<16x128xf32> -> vector<16x128xf32>
    %75 = arith.addf %69, %74 : vector<16x128xf32>
    %cst_77 = arith.constant dense<0.000000e+00> : vector<128xf32>
    %76 = vector.multi_reduction <add>, %75, %cst_77 [0] : vector<16x128xf32> to vector<128xf32>
    %77 = vector.shape_cast %76 : vector<128xf32> to vector<1x128xf32>
    %78 = arith.mulf %75, %75 : vector<16x128xf32>
    %cst_78 = arith.constant dense<0.000000e+00> : vector<128xf32>
    %79 = vector.multi_reduction <add>, %78, %cst_78 [0] : vector<16x128xf32> to vector<128xf32>
    %80 = vector.shape_cast %79 : vector<128xf32> to vector<1x128xf32>
    %cst_79 = arith.constant dense<0.000000e+00> : vector<1x16xf32>
    %81 = tpu.matmul %77, %2, %cst_79 {dimension_numbers = #tpu.dot_dimension_numbers<[1], [0], [0], [1], [0, 0, 1, 1], [], []>} : vector<1x128xf32>, vector<128x16xf32>, vector<1x16xf32> -> vector<1x16xf32>
    %cst_80 = arith.constant 7.812500e-03 : f32
    %82 = vector.broadcast %cst_80 : f32 to vector<1x16xf32>
    %83 = arith.mulf %81, %82 : vector<1x16xf32>
    %cst_81 = arith.constant dense<0.000000e+00> : vector<1x16xf32>
    %84 = tpu.matmul %80, %2, %cst_81 {dimension_numbers = #tpu.dot_dimension_numbers<[1], [0], [0], [1], [0, 0, 1, 1], [], []>} : vector<1x128xf32>, vector<128x16xf32>, vector<1x16xf32> -> vector<1x16xf32>
    %cst_82 = arith.constant 7.812500e-03 : f32
    %85 = vector.broadcast %cst_82 : f32 to vector<1x16xf32>
    %86 = arith.mulf %84, %85 : vector<1x16xf32>
    %87 = arith.mulf %83, %83 : vector<1x16xf32>
    %88 = arith.subf %86, %87 : vector<1x16xf32>
    %c1_83 = arith.constant 1 : index
    %c0_84 = arith.constant 0 : index
    %89 = vector.load %arg2[%c1_83, %c0_84] : memref<4x16xf32, #tpu.memory_space<vmem>>, vector<1x16xf32>
    %c1_85 = arith.constant 1 : index
    %c0_86 = arith.constant 0 : index
    %90 = vector.load %arg3[%c1_85, %c0_86] : memref<4x16xf32, #tpu.memory_space<vmem>>, vector<1x16xf32>
    %cst_87 = arith.constant 9.99999974E-6 : f32
    %91 = vector.broadcast %cst_87 : f32 to vector<1x16xf32>
    %92 = arith.addf %88, %91 : vector<1x16xf32>
    %93 = math.rsqrt %92 : vector<1x16xf32>
    %94 = arith.mulf %89, %93 : vector<1x16xf32>
    %95 = arith.mulf %83, %94 : vector<1x16xf32>
    %96 = arith.subf %90, %95 : vector<1x16xf32>
    %cst_88 = arith.constant dense<0.000000e+00> : vector<1x128xf32>
    %97 = tpu.matmul %94, %3, %cst_88 {dimension_numbers = #tpu.dot_dimension_numbers<[1], [0], [0], [1], [0, 0, 1, 1], [], []>} : vector<1x16xf32>, vector<16x128xf32>, vector<1x128xf32> -> vector<1x128xf32>
    %cst_89 = arith.constant dense<0.000000e+00> : vector<1x128xf32>
    %98 = tpu.matmul %96, %3, %cst_89 {dimension_numbers = #tpu.dot_dimension_numbers<[1], [0], [0], [1], [0, 0, 1, 1], [], []>} : vector<1x16xf32>, vector<16x128xf32>, vector<1x128xf32> -> vector<1x128xf32>
    %99 = vector.broadcast %97 : vector<1x128xf32> to vector<16x128xf32>
    %100 = arith.mulf %75, %99 : vector<16x128xf32>
    %101 = vector.broadcast %98 : vector<1x128xf32> to vector<16x128xf32>
    %102 = arith.addf %100, %101 : vector<16x128xf32>
    %103 = arith.addf %102, %5 : vector<16x128xf32>
    %cst_90 = arith.constant 0.000000e+00 : f32
    %104 = vector.broadcast %cst_90 : f32 to vector<16x128xf32>
    %105 = arith.maximumf %103, %104 : vector<16x128xf32>
    %106 = vector.shape_cast %105 : vector<16x128xf32> to vector<2x8x128xf32>
    %c0_91 = arith.constant 0 : index
    %c1_92 = arith.constant 1 : index
    %c0_93 = arith.constant 0 : index
    %107 = vector.load %arg7[%c0_91, %c1_92, %c0_93] : memref<2x10x128xf32, #tpu.memory_space<vmem>>, vector<2x8x128xf32>
    tpu.vector_store %arg7[%c0_91, %c1_92, %c0_93], %106 {strides = array<i32>} : memref<2x10x128xf32, #tpu.memory_space<vmem>>, vector<2x8x128xf32>,
    %cst_94 = arith.constant 0.000000e+00 : f32
    %108 = vector.broadcast %cst_94 : f32 to vector<16x128xf32>
    %c0_95 = arith.constant 0 : index
    %c0_96 = arith.constant 0 : index
    %c0_97 = arith.constant 0 : index
    %109 = vector.load %arg7[%c0_95, %c0_96, %c0_97] : memref<2x10x128xf32, #tpu.memory_space<vmem>>, vector<2x8x128xf32>
    %110 = vector.shape_cast %109 : vector<2x8x128xf32> to vector<16x128xf32>
    %c2_98 = arith.constant 2 : index
    %c0_99 = arith.constant 0 : index
    %c0_100 = arith.constant 0 : index
    %c0_101 = arith.constant 0 : index
    %111 = vector.load %arg1[%c2_98, %c0_99, %c0_100, %c0_101] : memref<4x3x128x128xf32, #tpu.memory_space<vmem>>, vector<1x1x128x128xf32>
    %112 = vector.shape_cast %111 : vector<1x1x128x128xf32> to vector<128x128xf32>
    %cst_102 = arith.constant dense<0.000000e+00> : vector<16x128xf32>
    %113 = tpu.matmul %110, %112, %cst_102 {dimension_numbers = #tpu.dot_dimension_numbers<[1], [0], [0], [1], [0, 0, 1, 1], [], []>} : vector<16x128xf32>, vector<128x128xf32>, vector<16x128xf32> -> vector<16x128xf32>
    %114 = arith.addf %108, %113 : vector<16x128xf32>
    %c0_103 = arith.constant 0 : index
    %c1_104 = arith.constant 1 : index
    %c0_105 = arith.constant 0 : index
    %115 = vector.load %arg7[%c0_103, %c1_104, %c0_105] : memref<2x10x128xf32, #tpu.memory_space<vmem>>, vector<2x8x128xf32>
    %116 = vector.shape_cast %115 : vector<2x8x128xf32> to vector<16x128xf32>
    %c2_106 = arith.constant 2 : index
    %c1_107 = arith.constant 1 : index
    %c0_108 = arith.constant 0 : index
    %c0_109 = arith.constant 0 : index
    %117 = vector.load %arg1[%c2_106, %c1_107, %c0_108, %c0_109] : memref<4x3x128x128xf32, #tpu.memory_space<vmem>>, vector<1x1x128x128xf32>
    %118 = vector.shape_cast %117 : vector<1x1x128x128xf32> to vector<128x128xf32>
    %cst_110 = arith.constant dense<0.000000e+00> : vector<16x128xf32>
    %119 = tpu.matmul %116, %118, %cst_110 {dimension_numbers = #tpu.dot_dimension_numbers<[1], [0], [0], [1], [0, 0, 1, 1], [], []>} : vector<16x128xf32>, vector<128x128xf32>, vector<16x128xf32> -> vector<16x128xf32>
    %120 = arith.addf %114, %119 : vector<16x128xf32>
    %c0_111 = arith.constant 0 : index
    %c2_112 = arith.constant 2 : index
    %c0_113 = arith.constant 0 : index
    %121 = vector.load %arg7[%c0_111, %c2_112, %c0_113] : memref<2x10x128xf32, #tpu.memory_space<vmem>>, vector<2x8x128xf32>
    %122 = vector.shape_cast %121 : vector<2x8x128xf32> to vector<16x128xf32>
    %c2_114 = arith.constant 2 : index
    %c2_115 = arith.constant 2 : index
    %c0_116 = arith.constant 0 : index
    %c0_117 = arith.constant 0 : index
    %123 = vector.load %arg1[%c2_114, %c2_115, %c0_116, %c0_117] : memref<4x3x128x128xf32, #tpu.memory_space<vmem>>, vector<1x1x128x128xf32>
    %124 = vector.shape_cast %123 : vector<1x1x128x128xf32> to vector<128x128xf32>
    %cst_118 = arith.constant dense<0.000000e+00> : vector<16x128xf32>
    %125 = tpu.matmul %122, %124, %cst_118 {dimension_numbers = #tpu.dot_dimension_numbers<[1], [0], [0], [1], [0, 0, 1, 1], [], []>} : vector<16x128xf32>, vector<128x128xf32>, vector<16x128xf32> -> vector<16x128xf32>
    %126 = arith.addf %120, %125 : vector<16x128xf32>
    %cst_119 = arith.constant dense<0.000000e+00> : vector<128xf32>
    %127 = vector.multi_reduction <add>, %126, %cst_119 [0] : vector<16x128xf32> to vector<128xf32>
    %128 = vector.shape_cast %127 : vector<128xf32> to vector<1x128xf32>
    %129 = arith.mulf %126, %126 : vector<16x128xf32>
    %cst_120 = arith.constant dense<0.000000e+00> : vector<128xf32>
    %130 = vector.multi_reduction <add>, %129, %cst_120 [0] : vector<16x128xf32> to vector<128xf32>
    %131 = vector.shape_cast %130 : vector<128xf32> to vector<1x128xf32>
    %cst_121 = arith.constant dense<0.000000e+00> : vector<1x16xf32>
    %132 = tpu.matmul %128, %2, %cst_121 {dimension_numbers = #tpu.dot_dimension_numbers<[1], [0], [0], [1], [0, 0, 1, 1], [], []>} : vector<1x128xf32>, vector<128x16xf32>, vector<1x16xf32> -> vector<1x16xf32>
    %cst_122 = arith.constant 7.812500e-03 : f32
    %133 = vector.broadcast %cst_122 : f32 to vector<1x16xf32>
    %134 = arith.mulf %132, %133 : vector<1x16xf32>
    %cst_123 = arith.constant dense<0.000000e+00> : vector<1x16xf32>
    %135 = tpu.matmul %131, %2, %cst_123 {dimension_numbers = #tpu.dot_dimension_numbers<[1], [0], [0], [1], [0, 0, 1, 1], [], []>} : vector<1x128xf32>, vector<128x16xf32>, vector<1x16xf32> -> vector<1x16xf32>
    %cst_124 = arith.constant 7.812500e-03 : f32
    %136 = vector.broadcast %cst_124 : f32 to vector<1x16xf32>
    %137 = arith.mulf %135, %136 : vector<1x16xf32>
    %138 = arith.mulf %134, %134 : vector<1x16xf32>
    %139 = arith.subf %137, %138 : vector<1x16xf32>
    %c2_125 = arith.constant 2 : index
    %c0_126 = arith.constant 0 : index
    %140 = vector.load %arg2[%c2_125, %c0_126] : memref<4x16xf32, #tpu.memory_space<vmem>>, vector<1x16xf32>
    %c2_127 = arith.constant 2 : index
    %c0_128 = arith.constant 0 : index
    %141 = vector.load %arg3[%c2_127, %c0_128] : memref<4x16xf32, #tpu.memory_space<vmem>>, vector<1x16xf32>
    %cst_129 = arith.constant 9.99999974E-6 : f32
    %142 = vector.broadcast %cst_129 : f32 to vector<1x16xf32>
    %143 = arith.addf %139, %142 : vector<1x16xf32>
    %144 = math.rsqrt %143 : vector<1x16xf32>
    %145 = arith.mulf %140, %144 : vector<1x16xf32>
    %146 = arith.mulf %134, %145 : vector<1x16xf32>
    %147 = arith.subf %141, %146 : vector<1x16xf32>
    %cst_130 = arith.constant dense<0.000000e+00> : vector<1x128xf32>
    %148 = tpu.matmul %145, %3, %cst_130 {dimension_numbers = #tpu.dot_dimension_numbers<[1], [0], [0], [1], [0, 0, 1, 1], [], []>} : vector<1x16xf32>, vector<16x128xf32>, vector<1x128xf32> -> vector<1x128xf32>
    %cst_131 = arith.constant dense<0.000000e+00> : vector<1x128xf32>
    %149 = tpu.matmul %147, %3, %cst_131 {dimension_numbers = #tpu.dot_dimension_numbers<[1], [0], [0], [1], [0, 0, 1, 1], [], []>} : vector<1x16xf32>, vector<16x128xf32>, vector<1x128xf32> -> vector<1x128xf32>
    %150 = vector.broadcast %148 : vector<1x128xf32> to vector<16x128xf32>
    %151 = arith.mulf %126, %150 : vector<16x128xf32>
    %152 = vector.broadcast %149 : vector<1x128xf32> to vector<16x128xf32>
    %153 = arith.addf %151, %152 : vector<16x128xf32>
    %cst_132 = arith.constant 0.000000e+00 : f32
    %154 = vector.broadcast %cst_132 : f32 to vector<16x128xf32>
    %155 = arith.maximumf %153, %154 : vector<16x128xf32>
    %156 = vector.shape_cast %155 : vector<16x128xf32> to vector<2x8x128xf32>
    %c0_133 = arith.constant 0 : index
    %c1_134 = arith.constant 1 : index
    %c0_135 = arith.constant 0 : index
    %157 = vector.load %arg7[%c0_133, %c1_134, %c0_135] : memref<2x10x128xf32, #tpu.memory_space<vmem>>, vector<2x8x128xf32>
    tpu.vector_store %arg7[%c0_133, %c1_134, %c0_135], %156 {strides = array<i32>} : memref<2x10x128xf32, #tpu.memory_space<vmem>>, vector<2x8x128xf32>,
    %cst_136 = arith.constant 0.000000e+00 : f32
    %158 = vector.broadcast %cst_136 : f32 to vector<16x128xf32>
    %c0_137 = arith.constant 0 : index
    %c0_138 = arith.constant 0 : index
    %c0_139 = arith.constant 0 : index
    %159 = vector.load %arg7[%c0_137, %c0_138, %c0_139] : memref<2x10x128xf32, #tpu.memory_space<vmem>>, vector<2x8x128xf32>
    %160 = vector.shape_cast %159 : vector<2x8x128xf32> to vector<16x128xf32>
    %c3 = arith.constant 3 : index
    %c0_140 = arith.constant 0 : index
    %c0_141 = arith.constant 0 : index
    %c0_142 = arith.constant 0 : index
    %161 = vector.load %arg1[%c3, %c0_140, %c0_141, %c0_142] : memref<4x3x128x128xf32, #tpu.memory_space<vmem>>, vector<1x1x128x128xf32>
    %162 = vector.shape_cast %161 : vector<1x1x128x128xf32> to vector<128x128xf32>
    %cst_143 = arith.constant dense<0.000000e+00> : vector<16x128xf32>
    %163 = tpu.matmul %160, %162, %cst_143 {dimension_numbers = #tpu.dot_dimension_numbers<[1], [0], [0], [1], [0, 0, 1, 1], [], []>} : vector<16x128xf32>, vector<128x128xf32>, vector<16x128xf32> -> vector<16x128xf32>
    %164 = arith.addf %158, %163 : vector<16x128xf32>
    %c0_144 = arith.constant 0 : index
    %c1_145 = arith.constant 1 : index
    %c0_146 = arith.constant 0 : index
    %165 = vector.load %arg7[%c0_144, %c1_145, %c0_146] : memref<2x10x128xf32, #tpu.memory_space<vmem>>, vector<2x8x128xf32>
    %166 = vector.shape_cast %165 : vector<2x8x128xf32> to vector<16x128xf32>
    %c3_147 = arith.constant 3 : index
    %c1_148 = arith.constant 1 : index
    %c0_149 = arith.constant 0 : index
    %c0_150 = arith.constant 0 : index
    %167 = vector.load %arg1[%c3_147, %c1_148, %c0_149, %c0_150] : memref<4x3x128x128xf32, #tpu.memory_space<vmem>>, vector<1x1x128x128xf32>
    %168 = vector.shape_cast %167 : vector<1x1x128x128xf32> to vector<128x128xf32>
    %cst_151 = arith.constant dense<0.000000e+00> : vector<16x128xf32>
    %169 = tpu.matmul %166, %168, %cst_151 {dimension_numbers = #tpu.dot_dimension_numbers<[1], [0], [0], [1], [0, 0, 1, 1], [], []>} : vector<16x128xf32>, vector<128x128xf32>, vector<16x128xf32> -> vector<16x128xf32>
    %170 = arith.addf %164, %169 : vector<16x128xf32>
    %c0_152 = arith.constant 0 : index
    %c2_153 = arith.constant 2 : index
    %c0_154 = arith.constant 0 : index
    %171 = vector.load %arg7[%c0_152, %c2_153, %c0_154] : memref<2x10x128xf32, #tpu.memory_space<vmem>>, vector<2x8x128xf32>
    %172 = vector.shape_cast %171 : vector<2x8x128xf32> to vector<16x128xf32>
    %c3_155 = arith.constant 3 : index
    %c2_156 = arith.constant 2 : index
    %c0_157 = arith.constant 0 : index
    %c0_158 = arith.constant 0 : index
    %173 = vector.load %arg1[%c3_155, %c2_156, %c0_157, %c0_158] : memref<4x3x128x128xf32, #tpu.memory_space<vmem>>, vector<1x1x128x128xf32>
    %174 = vector.shape_cast %173 : vector<1x1x128x128xf32> to vector<128x128xf32>
    %cst_159 = arith.constant dense<0.000000e+00> : vector<16x128xf32>
    %175 = tpu.matmul %172, %174, %cst_159 {dimension_numbers = #tpu.dot_dimension_numbers<[1], [0], [0], [1], [0, 0, 1, 1], [], []>} : vector<16x128xf32>, vector<128x128xf32>, vector<16x128xf32> -> vector<16x128xf32>
    %176 = arith.addf %170, %175 : vector<16x128xf32>
    %cst_160 = arith.constant dense<0.000000e+00> : vector<128xf32>
    %177 = vector.multi_reduction <add>, %176, %cst_160 [0] : vector<16x128xf32> to vector<128xf32>
    %178 = vector.shape_cast %177 : vector<128xf32> to vector<1x128xf32>
    %179 = arith.mulf %176, %176 : vector<16x128xf32>
    %cst_161 = arith.constant dense<0.000000e+00> : vector<128xf32>
    %180 = vector.multi_reduction <add>, %179, %cst_161 [0] : vector<16x128xf32> to vector<128xf32>
    %181 = vector.shape_cast %180 : vector<128xf32> to vector<1x128xf32>
    %cst_162 = arith.constant dense<0.000000e+00> : vector<1x16xf32>
    %182 = tpu.matmul %178, %2, %cst_162 {dimension_numbers = #tpu.dot_dimension_numbers<[1], [0], [0], [1], [0, 0, 1, 1], [], []>} : vector<1x128xf32>, vector<128x16xf32>, vector<1x16xf32> -> vector<1x16xf32>
    %cst_163 = arith.constant 7.812500e-03 : f32
    %183 = vector.broadcast %cst_163 : f32 to vector<1x16xf32>
    %184 = arith.mulf %182, %183 : vector<1x16xf32>
    %cst_164 = arith.constant dense<0.000000e+00> : vector<1x16xf32>
    %185 = tpu.matmul %181, %2, %cst_164 {dimension_numbers = #tpu.dot_dimension_numbers<[1], [0], [0], [1], [0, 0, 1, 1], [], []>} : vector<1x128xf32>, vector<128x16xf32>, vector<1x16xf32> -> vector<1x16xf32>
    %cst_165 = arith.constant 7.812500e-03 : f32
    %186 = vector.broadcast %cst_165 : f32 to vector<1x16xf32>
    %187 = arith.mulf %185, %186 : vector<1x16xf32>
    %188 = arith.mulf %184, %184 : vector<1x16xf32>
    %189 = arith.subf %187, %188 : vector<1x16xf32>
    %c3_166 = arith.constant 3 : index
    %c0_167 = arith.constant 0 : index
    %190 = vector.load %arg2[%c3_166, %c0_167] : memref<4x16xf32, #tpu.memory_space<vmem>>, vector<1x16xf32>
    %c3_168 = arith.constant 3 : index
    %c0_169 = arith.constant 0 : index
    %191 = vector.load %arg3[%c3_168, %c0_169] : memref<4x16xf32, #tpu.memory_space<vmem>>, vector<1x16xf32>
    %cst_170 = arith.constant 9.99999974E-6 : f32
    %192 = vector.broadcast %cst_170 : f32 to vector<1x16xf32>
    %193 = arith.addf %189, %192 : vector<1x16xf32>
    %194 = math.rsqrt %193 : vector<1x16xf32>
    %195 = arith.mulf %190, %194 : vector<1x16xf32>
    %196 = arith.mulf %184, %195 : vector<1x16xf32>
    %197 = arith.subf %191, %196 : vector<1x16xf32>
    %cst_171 = arith.constant dense<0.000000e+00> : vector<1x128xf32>
    %198 = tpu.matmul %195, %3, %cst_171 {dimension_numbers = #tpu.dot_dimension_numbers<[1], [0], [0], [1], [0, 0, 1, 1], [], []>} : vector<1x16xf32>, vector<16x128xf32>, vector<1x128xf32> -> vector<1x128xf32>
    %cst_172 = arith.constant dense<0.000000e+00> : vector<1x128xf32>
    %199 = tpu.matmul %197, %3, %cst_172 {dimension_numbers = #tpu.dot_dimension_numbers<[1], [0], [0], [1], [0, 0, 1, 1], [], []>} : vector<1x16xf32>, vector<16x128xf32>, vector<1x128xf32> -> vector<1x128xf32>
    %200 = vector.broadcast %198 : vector<1x128xf32> to vector<16x128xf32>
    %201 = arith.mulf %176, %200 : vector<16x128xf32>
    %202 = vector.broadcast %199 : vector<1x128xf32> to vector<16x128xf32>
    %203 = arith.addf %201, %202 : vector<16x128xf32>
    %204 = arith.addf %203, %105 : vector<16x128xf32>
    %cst_173 = arith.constant 0.000000e+00 : f32
    %205 = vector.broadcast %cst_173 : f32 to vector<16x128xf32>
    %206 = arith.maximumf %204, %205 : vector<16x128xf32>
    %c0_174 = arith.constant 0 : index
    %c0_175 = arith.constant 0 : index
    %207 = vector.load %arg6[%c0_174, %c0_175] : memref<16x128xf32, #tpu.memory_space<vmem>>, vector<16x128xf32>
    tpu.vector_store %arg6[%c0_174, %c0_175], %206 {strides = array<i32>} : memref<16x128xf32, #tpu.memory_space<vmem>>, vector<16x128xf32>,
    return
  }
}

</mosaic_0001>

<bundles_post_ra>
// kernel: tile.9
= control target key start
LH: loop header
LB: loop body
LE: loop exit
PB: predicated region body
PF: predicated region fallthrough
CT: control target
= control target key end

     0   :  { %vm4_vm0 = vcmask 1047556   ;;  %s209_s14 = smov 96   ;;  %s210_s19 = smov 112   ;;  %vm6_vm1 = vcmask 130048   ;;  %vm25_vm2 = vcmask 1048448   ;;  %vm46_vm3 = vcmask 917248   ;;  %s388_s0 = inlined_call_operand.vmem [shape: f32[8,16,16], index: 0, kind: input, shape index: {}]   ;;  %s389_s1 = inlined_call_operand.vmem [shape: f32[128,16], index: 1, kind: output, shape index: {}]  }
   0x1   :  { %v172_v0 = vld [vmem:[%s388_s0 + $0x6] ss:$8 sm:$0xf]   ;;  %v167_v3 = vld [vmem:[%s388_s0 + $0x7] ss:$8 sm:$0xf]  }
   0x2   :  { %v173_v1 = vld [vmem:[%s388_s0 + $0x6] ss:$8 sm:$0xf0]   ;;  %v168_v4 = vld [vmem:[%s388_s0 + $0x7] ss:$8 sm:$0xf0]  }
   0x3   :  { %v43_v2 = vsel %vm4_vm0, %v173_v1, %v172_v0  ;;  %v22_v5 = vsel %vm4_vm0, %v168_v4, %v167_v3  ;;  %v174_v6 = vld [vmem:[%s388_s0 + $0x46] ss:$8 sm:$0xf]   ;;  %v169_v9 = vld [vmem:[%s388_s0 + $0x47] ss:$8 sm:$0xf]  }
   0x4   :  { %44 = vrot.lane.b32.xlu1 %v43_v2, %s209_s14  ;;  %v175_v7 = vld [vmem:[%s388_s0 + $0x46] ss:$8 sm:$0xf0]   ;;  %23 = vrot.lane.b32.xlu0 %v22_v5, %s210_s19  ;;  %v170_v10 = vld [vmem:[%s388_s0 + $0x47] ss:$8 sm:$0xf0]  }
   0x5   :  { %v53_v8 = vsel %vm4_vm0, %v175_v7, %v174_v6  ;;  %v32_v11 = vsel %vm4_vm0, %v170_v10, %v169_v9  ;;  %v179_v12 = vld [vmem:[%s388_s0 + $0x45] ss:$8 sm:$0xf]   ;;  %v184_v18 = vld [vmem:[%s388_s0 + $0x44] ss:$8 sm:$0xf]  }
   0x6   :  { %v180_v13 = vld [vmem:[%s388_s0 + $0x45] ss:$8 sm:$0xf0]   ;;  %v185_v19 = vld [vmem:[%s388_s0 + $0x44] ss:$8 sm:$0xf0]  }
   0x7   :  { %v177_v14 = vld [vmem:[%s388_s0 + $0x5] ss:$8 sm:$0xf]   ;;  %v74_v16 = vsel %vm4_vm0, %v180_v13, %v179_v12  ;;  %v182_v20 = vld [vmem:[%s388_s0 + $0x4] ss:$8 sm:$0xf]   ;;  %v95_v22 = vsel %vm4_vm0, %v185_v19, %v184_v18 }
   0x8   :  { %54 = vrot.lane.b32.xlu1 %v53_v8, %s209_s14  ;;  %v178_v15 = vld [vmem:[%s388_s0 + $0x5] ss:$8 sm:$0xf0]   ;;  %33 = vrot.lane.b32.xlu0 %v32_v11, %s210_s19  ;;  %v183_v21 = vld [vmem:[%s388_s0 + $0x4] ss:$8 sm:$0xf0]  }
   0x9   :  { %v64_v17 = vsel %vm4_vm0, %v178_v15, %v177_v14  ;;  %s211_s11 = smov 80   ;;  %v85_v23 = vsel %vm4_vm0, %v183_v21, %v182_v20  ;;  %v189_v24 = vld [vmem:[%s388_s0 + $0x43] ss:$8 sm:$0xf]   ;;  %s212_s20 = smov 64   ;;  %vm67_vm4 = vcmask 786048  }
   0xa   :  { %v190_v25 = vld [vmem:[%s388_s0 + $0x43] ss:$8 sm:$0xf0]   ;;  %v194_v28 = vld [vmem:[%s388_s0 + $0x42] ss:$8 sm:$0xf]  }
   0xb   :  { %v187_v26 = vld [vmem:[%s388_s0 + $0x3] ss:$8 sm:$0xf]   ;;  %v195_v29 = vld [vmem:[%s388_s0 + $0x42] ss:$8 sm:$0xf0]   ;;  %v116_v30 = vsel %vm4_vm0, %v190_v25, %v189_v24 }
   0xc   :  { %75 = vrot.lane.b32.xlu1 %v74_v16, %s211_s11  ;;  %65 = vrot.lane.b32.xlu0 %v64_v17, %s211_s11  ;;  %v188_v27 = vld [vmem:[%s388_s0 + $0x3] ss:$8 sm:$0xf0]   ;;  %v192_v31 = vld [vmem:[%s388_s0 + $0x2] ss:$8 sm:$0xf]   ;;  %v137_v40 = vsel %vm4_vm0, %v195_v29, %v194_v28 }
   0xd   :  { %v2_v32 = vld [vmem:[%s388_s0] ss:$8 sm:$0xf]   ;;  %v106_v33 = vsel %vm4_vm0, %v188_v27, %v187_v26  ;;  %v193_v36 = vld [vmem:[%s388_s0 + $0x2] ss:$8 sm:$0xf0]  }
   0xe   :  { %v3_v34 = vld [vmem:[%s388_s0] ss:$8 sm:$0xf0]   ;;  %s213_s8 = smov 48   ;;  %v127_v41 = vsel %vm4_vm0, %v193_v36, %v192_v31  ;;  %s215_s21 = smov 16   ;;  %vm88_vm5 = vcmask 654848  }
   0xf   :  { %v164_v35 = vld [vmem:[%s388_s0 + $0x40] ss:$8 sm:$0xf]   ;;  %v5_v37 = vsel %vm4_vm0, %v3_v34, %v2_v32  ;;  %v199_v42 = vld [vmem:[%s388_s0 + $0x41] ss:$8 sm:$0xf]  }
  0x10   :  { %96 = vrot.lane.b32.xlu1 %v95_v22, %s212_s20  ;;  %86 = vrot.lane.b32.xlu0 %v85_v23, %s212_s20  ;;  %v165_v38 = vld [vmem:[%s388_s0 + $0x40] ss:$8 sm:$0xf0]   ;;  %7 = vst.msk [vmem:[%s389_s1] sm:$0xff] %vm6_vm1, %v5_v37   ;;  %vm109_vm6 = vcmask 523648   ;;  %vm130_vm7 = vcmask 392448  }
  0x11   :  { %v13_v39 = vsel %vm4_vm0, %v165_v38, %v164_v35  ;;  %v200_v43 = vld [vmem:[%s388_s0 + $0x41] ss:$8 sm:$0xf0]   ;;  %vm151_vm8 = vcmask 261248  }
  0x12   :  { %166 = vst.msk [vmem:[%s389_s1 + $0x8] sm:$0xff] %vm6_vm1, %v13_v39   ;;  %v197_v44 = vld [vmem:[%s388_s0 + $0x1] ss:$8 sm:$0xf]   ;;  %v158_v46 = vsel %vm4_vm0, %v200_v43, %v199_v42 }
  0x13   :  { %v198_v45 = vld [vmem:[%s388_s0 + $0x1] ss:$8 sm:$0xf0]   ;;  %s214_s0 = smov 32  }
  0x14   :  { %117 = vrot.lane.b32.xlu1 %v116_v30, %s213_s8  ;;  %107 = vrot.lane.b32.xlu0 %v106_v33, %s213_s8  ;;  %v148_v47 = vsel %vm4_vm0, %v198_v45, %v197_v44 }
  0x18   :  { %138 = vrot.lane.b32.xlu1 %v137_v40, %s214_s0  ;;  %128 = vrot.lane.b32.xlu0 %v127_v41, %s214_s0 }
  0x1c   :  { %159 = vrot.lane.b32.xlu1 %v158_v46, %s215_s21  ;;  %149 = vrot.lane.b32.xlu0 %v148_v47, %s215_s21 }
  0x76   :  { %v45_v48 = vpop.permute.xlu1 %44   ;;  %v24_v49 = vpop.permute.xlu0 %23  }
  0x77   :  { %26 = vst.msk [vmem:[%s389_s1] sm:$0xff] %vm25_vm2, %v24_v49  }
  0x78   :  { %47 = vst.msk [vmem:[%s389_s1] sm:$0xff] %vm46_vm3, %v45_v48  }
  0x7a   :  { %v55_v50 = vpop.permute.xlu1 %54   ;;  %v34_v51 = vpop.permute.xlu0 %33  }
  0x7b   :  { %171 = vst.msk [vmem:[%s389_s1 + $0x8] sm:$0xff] %vm25_vm2, %v34_v51  }
  0x7c   :  { %176 = vst.msk [vmem:[%s389_s1 + $0x8] sm:$0xff] %vm46_vm3, %v55_v50  }
  0x7e   :  { %v76_v52 = vpop.permute.xlu1 %75   ;;  %v66_v53 = vpop.permute.xlu0 %65  }
  0x7f   :  { %181 = vst.msk [vmem:[%s389_s1 + $0x8] sm:$0xff] %vm67_vm4, %v76_v52   ;;  %68 = vst.msk [vmem:[%s389_s1] sm:$0xff] %vm67_vm4, %v66_v53  }
  0x82   :  { %v97_v54 = vpop.permute.xlu1 %96   ;;  %v87_v55 = vpop.permute.xlu0 %86  }
  0x83   :  { %186 = vst.msk [vmem:[%s389_s1 + $0x8] sm:$0xff] %vm88_vm5, %v97_v54   ;;  %89 = vst.msk [vmem:[%s389_s1] sm:$0xff] %vm88_vm5, %v87_v55  }
  0x86   :  { %v118_v56 = vpop.permute.xlu1 %117   ;;  %v108_v57 = vpop.permute.xlu0 %107  }
  0x87   :  { %191 = vst.msk [vmem:[%s389_s1 + $0x8] sm:$0xff] %vm109_vm6, %v118_v56   ;;  %110 = vst.msk [vmem:[%s389_s1] sm:$0xff] %vm109_vm6, %v108_v57  }
  0x8a   :  { %v139_v58 = vpop.permute.xlu1 %138   ;;  %v129_v59 = vpop.permute.xlu0 %128  }
  0x8b   :  { %196 = vst.msk [vmem:[%s389_s1 + $0x8] sm:$0xff] %vm130_vm7, %v139_v58   ;;  %131 = vst.msk [vmem:[%s389_s1] sm:$0xff] %vm130_vm7, %v129_v59  }
  0x8e   :  { %v160_v60 = vpop.permute.xlu1 %159   ;;  %v150_v61 = vpop.permute.xlu0 %149  }
  0x8f   :  { %201 = vst.msk [vmem:[%s389_s1 + $0x8] sm:$0xff] %vm151_vm8, %v160_v60   ;;  %152 = vst.msk [vmem:[%s389_s1] sm:$0xff] %vm151_vm8, %v150_v61  }

// kernel: simple_resnet_forward.1
= control target key start
LH: loop header
LB: loop body
LE: loop exit
PB: predicated region body
PF: predicated region fallthrough
CT: control target
= control target key end

     0   :  { %v3853_v3 = vmov 0.0   ;;  %vm3854_vm0 = vmmov 0   ;;  %vm499_vm1 = vcmask 130048   ;;  %s5080_s1 = inlined_call_operand.vmem [shape: f32[4,3,128,128], index: 1, kind: input, shape index: {}]   ;;  %s5081_s0 = inlined_call_operand.vmem [shape: f32[2,8,128], index: 0, kind: input, shape index: {}]   ;;  %s5082_s4 = inlined_call_operand.vmem [shape: f32[128,16], index: 4, kind: input, shape index: {}]   ;;  %s5083_s5 = inlined_call_operand.vmem [shape: f32[16,128], index: 5, kind: input, shape index: {}]   ;;  %s5084_s2 = inlined_call_operand.vmem [shape: f32[4,16], index: 2, kind: input, shape index: {}]   ;;  %s5085_s3 = inlined_call_operand.vmem [shape: f32[4,16], index: 3, kind: input, shape index: {}]   ;;  %s5086_s6 = inlined_call_operand.vmem [shape: f32[16,128], index: 6, kind: output, shape index: {}]  }
   0x1   :  { %v2524_v0 = vld [vmem:[%s5080_s1 + $0xf8] sm:$0xff]  ;;  %v2523_v2 = vld [vmem:[%s5080_s1 + $0xf0] sm:$0xff]  ;;  %23 = vst [vmem:[#allocation2] sm:$0xff] %v3853_v3  ;;  %24 = vst [vmem:[#allocation2 + $0x8] sm:$0x3] %v3853_v3 }
   0x2   :  { %v66_v1 = vld [vmem:[%s5080_s1 + $0x78] sm:$0xff]  ;;  %25 = vst [vmem:[#allocation2 + $0x10] sm:$0xff] %v3853_v3  ;;  %26 = vst [vmem:[#allocation2 + $0x18] sm:$0x3] %v3853_v3  ;;  %3069 = vmatprep.subr.mxu0 %v2524_v0  ;;  %v65_v4 = vld [vmem:[%s5080_s1 + $0x70] sm:$0xff] }
   0x3   :  { %3104 = vmatprep.subr.mxu1 %v66_v1  ;;  %3070 = vmatpush3.msra.mxu0 %v2524_v0  ;;  %v2522_v5 = vld [vmem:[%s5080_s1 + $0xe8] sm:$0xff]  ;;  %v2521_v7 = vld [vmem:[%s5080_s1 + $0xe0] sm:$0xff]  ;;  %v2520_v9 = vld [vmem:[%s5080_s1 + $0xd8] sm:$0xff] }
   0x4   :  { %3105 = vmatpush3.msra.mxu1 %v66_v1  ;;  %v64_v6 = vld [vmem:[%s5080_s1 + $0x68] sm:$0xff]  ;;  %3071 = vmatprep.subr.mxu0 %v2523_v2  ;;  %v63_v8 = vld [vmem:[%s5080_s1 + $0x60] sm:$0xff]  ;;  %v62_v10 = vld [vmem:[%s5080_s1 + $0x58] sm:$0xff] }
   0x5   :  { %3106 = vmatprep.subr.mxu1 %v65_v4  ;;  %3072 = vmatpush3.msra.mxu0 %v2523_v2  ;;  %v2519_v11 = vld [vmem:[%s5080_s1 + $0xd0] sm:$0xff]  ;;  %v2518_v13 = vld [vmem:[%s5080_s1 + $0xc8] sm:$0xff]  ;;  %v3939_v15 = vld [vmem:[%s5081_s0] sm:$0xff] }
   0x6   :  { %3107 = vmatpush3.msra.mxu1 %v65_v4  ;;  %3073 = vmatprep.subr.mxu0 %v2522_v5  ;;  %v61_v12 = vld [vmem:[%s5080_s1 + $0x50] sm:$0xff]  ;;  %v60_v14 = vld [vmem:[%s5080_s1 + $0x48] sm:$0xff]  ;;  %47 = vst [vmem:[#allocation2 + $0x1] sm:$0xff] %v3939_v15  ;;  %v2517_v17 = vld [vmem:[%s5080_s1 + $0xc0] sm:$0xff] }
   0x7   :  { %3108 = vmatprep.subr.mxu1 %v64_v6  ;;  %3074 = vmatpush3.msra.mxu0 %v2522_v5  ;;  %v3945_v16 = vld [vmem:[%s5081_s0 + $0x8] sm:$0xff]  ;;  %v59_v18 = vld [vmem:[%s5080_s1 + $0x40] sm:$0xff]  ;;  %v2516_v19 = vld [vmem:[%s5080_s1 + $0xb8] sm:$0xff] }
   0x8   :  { %3109 = vmatpush3.msra.mxu1 %v64_v6  ;;  %3075 = vmatprep.subr.mxu0 %v2521_v7  ;;  %48 = vst [vmem:[#allocation2 + $0x11] sm:$0xff] %v3945_v16  ;;  %v58_v20 = vld [vmem:[%s5080_s1 + $0x38] sm:$0xff]  ;;  %v2515_v21 = vld [vmem:[%s5080_s1 + $0xb0] sm:$0xff]  ;;  %v2514_v23 = vld [vmem:[%s5080_s1 + $0xa8] sm:$0xff] }
   0x9   :  { %3110 = vmatprep.subr.mxu1 %v63_v8  ;;  %3076 = vmatpush3.msra.mxu0 %v2521_v7  ;;  %v57_v22 = vld [vmem:[%s5080_s1 + $0x30] sm:$0xff]  ;;  %v56_v24 = vld [vmem:[%s5080_s1 + $0x28] sm:$0xff]  ;;  %v2513_v25 = vld [vmem:[%s5080_s1 + $0xa0] sm:$0xff] }
   0xa   :  { %3111 = vmatpush3.msra.mxu1 %v63_v8  ;;  %3077 = vmatprep.subr.mxu0 %v2520_v9  ;;  %v55_v26 = vld [vmem:[%s5080_s1 + $0x20] sm:$0xff]  ;;  %v2512_v27 = vld [vmem:[%s5080_s1 + $0x98] sm:$0xff]  ;;  %v2511_v29 = vld [vmem:[%s5080_s1 + $0x90] sm:$0xff] }
   0xb   :  { %3112 = vmatprep.subr.mxu1 %v62_v10  ;;  %3078 = vmatpush3.msra.mxu0 %v2520_v9  ;;  %v54_v28 = vld [vmem:[%s5080_s1 + $0x18] sm:$0xff]  ;;  %v53_v30 = vld [vmem:[%s5080_s1 + $0x10] sm:$0xff]  ;;  %v2510_v31 = vld [vmem:[%s5080_s1 + $0x88] sm:$0xff] }
   0xc   :  { %3113 = vmatpush3.msra.mxu1 %v62_v10  ;;  %3079 = vmatprep.subr.mxu0 %v2519_v11  ;;  %v52_v32 = vld [vmem:[%s5080_s1 + $0x8] sm:$0xff]  ;;  %v2509_v33 = vld [vmem:[%s5080_s1 + $0x80] sm:$0xff]  ;;  %v2540_v37 = vld [vmem:[%s5080_s1 + $0x178] sm:$0xff] }
   0xd   :  { %3114 = vmatprep.subr.mxu1 %v61_v12  ;;  %3080 = vmatpush3.msra.mxu0 %v2519_v11  ;;  %v51_v34 = vld [vmem:[%s5080_s1] sm:$0xff]  ;;  %v2539_v39 = vld [vmem:[%s5080_s1 + $0x170] sm:$0xff]  ;;  %v2538_v40 = vld [vmem:[%s5080_s1 + $0x168] sm:$0xff] }
   0xe   :  { %3115 = vmatpush3.msra.mxu1 %v61_v12  ;;  %3081 = vmatprep.subr.mxu0 %v2518_v13  ;;  %v49_v35 = vld [vmem:[#allocation2] sm:$0xff]  ;;  %v2536_v42 = vld [vmem:[%s5080_s1 + $0x158] sm:$0xff]  ;;  %v2535_v43 = vld [vmem:[%s5080_s1 + $0x150] sm:$0xff] }
   0xf   :  { %3116 = vmatprep.subr.mxu1 %v60_v14  ;;  %3082 = vmatpush3.msra.mxu0 %v2518_v13  ;;  %v50_v36 = vld [vmem:[#allocation2 + $0x10] sm:$0xff]  ;;  %v236_v38 = vld [vmem:[#allocation2 + $0x2] sm:$0xff]  ;;  %v2532_v46 = vld [vmem:[%s5080_s1 + $0x138] sm:$0xff] }
  0x10   :  { %3117 = vmatpush3.msra.mxu1 %v60_v14  ;;  %3083 = vmatprep.subr.mxu0 %v2517_v17  ;;  %v2537_v41 = vld [vmem:[%s5080_s1 + $0x160] sm:$0xff]  ;;  %v2534_v44 = vld [vmem:[%s5080_s1 + $0x148] sm:$0xff]  ;;  %v2531_v47 = vld [vmem:[%s5080_s1 + $0x130] sm:$0xff] }
  0x11   :  { %3118 = vmatprep.subr.mxu1 %v59_v18  ;;  %3084 = vmatpush3.msra.mxu0 %v2517_v17  ;;  %v2533_v45 = vld [vmem:[%s5080_s1 + $0x140] sm:$0xff]  ;;  %v2530_v48 = vld [vmem:[%s5080_s1 + $0x128] sm:$0xff]  ;;  %v2528_v50 = vld [vmem:[%s5080_s1 + $0x118] sm:$0xff] }
  0x12   :  { %3119 = vmatpush3.msra.mxu1 %v59_v18  ;;  %3085 = vmatprep.subr.mxu0 %v2516_v19  ;;  %v2529_v49 = vld [vmem:[%s5080_s1 + $0x120] sm:$0xff]  ;;  %v2527_v51 = vld [vmem:[%s5080_s1 + $0x110] sm:$0xff]  ;;  %v2526_v52 = vld [vmem:[%s5080_s1 + $0x108] sm:$0xff] }
  0x13   :  { %3120 = vmatprep.subr.mxu1 %v58_v20  ;;  %3086 = vmatpush3.msra.mxu0 %v2516_v19  ;;  %v2525_v53 = vld [vmem:[%s5080_s1 + $0x100] sm:$0xff]  ;;  %v237_v54 = vld [vmem:[#allocation2 + $0x12] sm:$0xff]  ;;  %v4071_v57 = vld [vmem:[%s5082_s4 + $0x68] sm:$0xff] }
  0x14   :  { %3121 = vmatpush3.msra.mxu1 %v58_v20  ;;  %3087 = vmatprep.subr.mxu0 %v2515_v21  ;;  %v4057_v55 = vld [vmem:[%s5082_s4 + $0x78] sm:$0xff]  ;;  %v4062_v56 = vld [vmem:[%s5082_s4 + $0x70] sm:$0xff]  ;;  %v4080_v58 = vld [vmem:[%s5082_s4 + $0x60] sm:$0xff] }
  0x15   :  { %3122 = vmatprep.subr.mxu1 %v57_v22  ;;  %3088 = vmatpush3.msra.mxu0 %v2515_v21  ;;  %v4089_v59 = vld [vmem:[%s5082_s4 + $0x58] sm:$0xff]  ;;  %v4098_v60 = vld [vmem:[%s5082_s4 + $0x50] sm:$0xff]  ;;  %v4111_v61 = vld [vmem:[%s5082_s4 + $0x48] sm:$0xff] }
  0x16   :  { %3123 = vmatpush3.msra.mxu1 %v57_v22  ;;  %3089 = vmatprep.subr.mxu0 %v2514_v23  ;;  %v4119_v62 = vld [vmem:[%s5082_s4 + $0x40] sm:$0xff]  ;;  %v4128_v63 = vld [vmem:[%s5082_s4 + $0x38] sm:$0xff]  ;;  %v4137_v0 = vld [vmem:[%s5082_s4 + $0x30] sm:$0xff] }
  0x17   :  { %3124 = vmatprep.subr.mxu1 %v56_v24  ;;  %3090 = vmatpush3.msra.mxu0 %v2514_v23  ;;  %v4146_v1 = vld [vmem:[%s5082_s4 + $0x28] sm:$0xff]  ;;  %v4155_v2 = vld [vmem:[%s5082_s4 + $0x20] sm:$0xff]  ;;  %v4164_v4 = vld [vmem:[%s5082_s4 + $0x18] sm:$0xff] }
  0x18   :  { %3125 = vmatpush3.msra.mxu1 %v56_v24  ;;  %3091 = vmatprep.subr.mxu0 %v2513_v25  ;;  %v4173_v5 = vld [vmem:[%s5082_s4 + $0x10] sm:$0xff]  ;;  %v4179_v6 = vld [vmem:[%s5082_s4 + $0x8] sm:$0xff]  ;;  %v4188_v7 = vld [vmem:[%s5082_s4] sm:$0xff] }
  0x19   :  { %3126 = vmatprep.subr.mxu1 %v55_v26  ;;  %3092 = vmatpush3.msra.mxu0 %v2513_v25 }
  0x1a   :  { %3127 = vmatpush3.msra.mxu1 %v55_v26  ;;  %3093 = vmatprep.subr.mxu0 %v2512_v27 }
  0x1b   :  { %3128 = vmatprep.subr.mxu1 %v54_v28  ;;  %3094 = vmatpush3.msra.mxu0 %v2512_v27 }
  0x1c   :  { %3129 = vmatpush3.msra.mxu1 %v54_v28  ;;  %3095 = vmatprep.subr.mxu0 %v2511_v29 }
  0x1d   :  { %3130 = vmatprep.subr.mxu1 %v53_v30  ;;  %3096 = vmatpush3.msra.mxu0 %v2511_v29 }
  0x1e   :  { %3131 = vmatpush3.msra.mxu1 %v53_v30  ;;  %3097 = vmatprep.subr.mxu0 %v2510_v31 }
  0x1f   :  { %3132 = vmatprep.subr.mxu1 %v52_v32  ;;  %3098 = vmatpush3.msra.mxu0 %v2510_v31 }
  0x20   :  { %3133 = vmatpush3.msra.mxu1 %v52_v32  ;;  %3099 = vmatprep.subr.mxu0 %v2509_v33 }
  0x21   :  { %3134 = vmatprep.subr.mxu1 %v51_v34  ;;  %3100 = vmatpush3.msra.mxu0 %v2509_v33 }
  0x22   :  { %3101 = vmatprep.mubr.f32.mxu0 %v3939_v15  ;;  %3135 = vmatpush3.msra.mxu1 %v51_v34 }
  0x23   :  { %3136 = vmatprep.mubr.f32.mxu1 %v49_v35  ;;  %3102 = vmatmul.mubr.f32.vlgmr.msra.gmra.mxu0 %v3945_v16 }
  0x24   :  { %3137 = vmatmul.mubr.f32.vlgmr.msra.gmra.mxu1 %v50_v36  ;;  %3139 = vmatprep.subr.mxu0 %v2540_v37  ;;  %v4216_v36 = vld [vmem:[%s5083_s5 + $0x8] sm:$0xff] }
  0x25   :  { %3171 = vmatprep.mubr.f32.mxu0 %v236_v38  ;;  %3140 = vmatpush3.msra.mxu0 %v2540_v37  ;;  %v4221_v37 = vld [vmem:[%s5083_s5] sm:$0xff]  ;;  %v2558_v38 = vld [vmem:[%s5080_s1 + $0x1f8] sm:$0xff] }
  0x26   :  { %3174 = vmatprep.subr.mxu1 %v3853_v3  ;;  %3141 = vmatprep.subr.mxu0 %v2539_v39 }
  0x27   :  { %3142 = vmatpush3.msra.mxu0 %v2539_v39  ;;  %3175 = vmatpush3.msra.mxu1 %v4057_v55  ;;  %v2557_v39 = vld [vmem:[%s5080_s1 + $0x1f0] sm:$0xff] }
  0x28   :  { %3143 = vmatprep.subr.mxu0 %v2538_v40  ;;  %3176 = vmatprep.subr.mxu1 %v3853_v3 }
  0x29   :  { %3144 = vmatpush3.msra.mxu0 %v2538_v40  ;;  %3177 = vmatpush3.msra.mxu1 %v4062_v56  ;;  %v2556_v40 = vld [vmem:[%s5080_s1 + $0x1e8] sm:$0xff] }
  0x2a   :  { %3145 = vmatprep.subr.mxu0 %v2537_v41  ;;  %3178 = vmatprep.subr.mxu1 %v3853_v3 }
  0x2b   :  { %3146 = vmatpush3.msra.mxu0 %v2537_v41  ;;  %3179 = vmatpush3.msra.mxu1 %v4071_v57  ;;  %v2555_v41 = vld [vmem:[%s5080_s1 + $0x1e0] sm:$0xff] }
  0x2c   :  { %3147 = vmatprep.subr.mxu0 %v2536_v42  ;;  %3180 = vmatprep.subr.mxu1 %v3853_v3 }
  0x2d   :  { %3148 = vmatpush3.msra.mxu0 %v2536_v42  ;;  %3181 = vmatpush3.msra.mxu1 %v4080_v58  ;;  %v2554_v42 = vld [vmem:[%s5080_s1 + $0x1d8] sm:$0xff] }
  0x2e   :  { %3149 = vmatprep.subr.mxu0 %v2535_v43  ;;  %3182 = vmatprep.subr.mxu1 %v3853_v3 }
  0x2f   :  { %3150 = vmatpush3.msra.mxu0 %v2535_v43  ;;  %3183 = vmatpush3.msra.mxu1 %v4089_v59  ;;  %v2553_v43 = vld [vmem:[%s5080_s1 + $0x1d0] sm:$0xff] }
  0x30   :  { %3151 = vmatprep.subr.mxu0 %v2534_v44  ;;  %3184 = vmatprep.subr.mxu1 %v3853_v3 }
  0x31   :  { %3152 = vmatpush3.msra.mxu0 %v2534_v44  ;;  %3185 = vmatpush3.msra.mxu1 %v4098_v60 }
  0x32   :  { %3153 = vmatprep.subr.mxu0 %v2533_v45  ;;  %3186 = vmatprep.subr.mxu1 %v3853_v3 }
  0x33   :  { %3154 = vmatpush3.msra.mxu0 %v2533_v45  ;;  %3187 = vmatpush3.msra.mxu1 %v4111_v61 }
  0x34   :  { %3155 = vmatprep.subr.mxu0 %v2532_v46  ;;  %3188 = vmatprep.subr.mxu1 %v3853_v3 }
  0x35   :  { %3156 = vmatpush3.msra.mxu0 %v2532_v46  ;;  %3189 = vmatpush3.msra.mxu1 %v4119_v62 }
  0x36   :  { %3157 = vmatprep.subr.mxu0 %v2531_v47  ;;  %3190 = vmatprep.subr.mxu1 %v3853_v3 }
  0x37   :  { %3158 = vmatpush3.msra.mxu0 %v2531_v47  ;;  %3191 = vmatpush3.msra.mxu1 %v4128_v63 }
  0x38   :  { %3159 = vmatprep.subr.mxu0 %v2530_v48  ;;  %3192 = vmatprep.subr.mxu1 %v3853_v3 }
  0x39   :  { %3160 = vmatpush3.msra.mxu0 %v2530_v48  ;;  %3193 = vmatpush3.msra.mxu1 %v4137_v0 }
  0x3a   :  { %3161 = vmatprep.subr.mxu0 %v2529_v49  ;;  %3194 = vmatprep.subr.mxu1 %v3853_v3 }
  0x3b   :  { %3162 = vmatpush3.msra.mxu0 %v2529_v49  ;;  %3195 = vmatpush3.msra.mxu1 %v4146_v1 }
  0x3c   :  { %3163 = vmatprep.subr.mxu0 %v2528_v50  ;;  %3196 = vmatprep.subr.mxu1 %v3853_v3 }
  0x3d   :  { %3164 = vmatpush3.msra.mxu0 %v2528_v50  ;;  %3197 = vmatpush3.msra.mxu1 %v4155_v2 }
  0x3e   :  { %3165 = vmatprep.subr.mxu0 %v2527_v51  ;;  %3198 = vmatprep.subr.mxu1 %v3853_v3 }
  0x3f   :  { %3166 = vmatpush3.msra.mxu0 %v2527_v51  ;;  %3199 = vmatpush3.msra.mxu1 %v4164_v4 }
  0x40   :  { %3167 = vmatprep.subr.mxu0 %v2526_v52  ;;  %3200 = vmatprep.subr.mxu1 %v3853_v3 }
  0x41   :  { %3168 = vmatpush3.msra.mxu0 %v2526_v52  ;;  %3201 = vmatpush3.msra.mxu1 %v4173_v5 }
  0x42   :  { %3169 = vmatprep.subr.mxu0 %v2525_v53  ;;  %3202 = vmatprep.subr.mxu1 %v3853_v3 }
  0x43   :  { %3170 = vmatpush3.msra.mxu0 %v2525_v53  ;;  %3203 = vmatpush3.msra.mxu1 %v4179_v6  ;;  %v492_v53 = vld [vmem:[%s5084_s2] sm:$0x1] }
  0x44   :  { %3172 = vmatmul.mubr.f32.vlgmr.msra.gmra.mxu0 %v237_v54  ;;  %3209 = vmatprep.subr.mxu0 %v3853_v3 }
  0x45   :  { %3210 = vmatpush3.msra.mxu0 %v4057_v55  ;;  %3206 = vmatprep.mubr.msk.f32.mxu1 %vm3854_vm0, %v3853_v3 }
  0x46   :  { %3211 = vmatprep.subr.mxu0 %v3853_v3  ;;  %3204 = vmatprep.subr.mxu1 %v3853_v3 }
  0x47   :  { %3212 = vmatpush3.msra.mxu0 %v4062_v56  ;;  %3205 = vmatpush3.msra.mxu1 %v4188_v7 }
  0x48   :  { %3213 = vmatprep.subr.mxu0 %v3853_v3  ;;  %3241 = vmatprep.mubr.msk.f32.mxu0 %vm3854_vm0, %v3853_v3 }
  0x49   :  { %3214 = vmatpush3.msra.mxu0 %v4071_v57  ;;  %3244 = vmatprep.subr.mxu1 %v3853_v3 }
  0x4a   :  { %3215 = vmatprep.subr.mxu0 %v3853_v3 }
  0x4b   :  { %3216 = vmatpush3.msra.mxu0 %v4080_v58 }
  0x4c   :  { %3217 = vmatprep.subr.mxu0 %v3853_v3 }
  0x4d   :  { %3218 = vmatpush3.msra.mxu0 %v4089_v59 }
  0x4e   :  { %3219 = vmatprep.subr.mxu0 %v3853_v3 }
  0x4f   :  { %3220 = vmatpush3.msra.mxu0 %v4098_v60 }
  0x50   :  { %3221 = vmatprep.subr.mxu0 %v3853_v3 }
  0x51   :  { %3222 = vmatpush3.msra.mxu0 %v4111_v61 }
  0x52   :  { %3223 = vmatprep.subr.mxu0 %v3853_v3 }
  0x53   :  { %3224 = vmatpush3.msra.mxu0 %v4119_v62 }
  0x54   :  { %3225 = vmatprep.subr.mxu0 %v3853_v3 }
  0x55   :  { %3226 = vmatpush3.msra.mxu0 %v4128_v63 }
  0x56   :  { %3227 = vmatprep.subr.mxu0 %v3853_v3 }
  0x57   :  { %3228 = vmatpush3.msra.mxu0 %v4137_v0 }
  0x58   :  { %3229 = vmatprep.subr.mxu0 %v3853_v3 }
  0x59   :  { %3230 = vmatpush3.msra.mxu0 %v4146_v1 }
  0x5a   :  { %3231 = vmatprep.subr.mxu0 %v3853_v3 }
  0x5b   :  { %3232 = vmatpush3.msra.mxu0 %v4155_v2 }
  0x5c   :  { %3233 = vmatprep.subr.mxu0 %v3853_v3 }
  0x5d   :  { %3234 = vmatpush3.msra.mxu0 %v4164_v4 }
  0x5e   :  { %3235 = vmatprep.subr.mxu0 %v3853_v3 }
  0x5f   :  { %3236 = vmatpush3.msra.mxu0 %v4173_v5 }
  0x60   :  { %3237 = vmatprep.subr.mxu0 %v3853_v3 }
  0x61   :  { %3238 = vmatpush3.msra.mxu0 %v4179_v6 }
  0x62   :  { %3239 = vmatprep.subr.mxu0 %v3853_v3 }
  0x63   :  { %3240 = vmatpush3.msra.mxu0 %v4188_v7 }
  0x64   :  { %3293 = vmatprep.subr.mxu0 %v2558_v38 }
  0xe3   :  { %v3103_v8 = vpop.f32.mrf.mxu0 }
  0xe4   :  { %v3138_v9 = vpop.f32.mrf.mxu1 }
  0xe5   :  { %v152_v10 = vpop.f32.mrf.mxu0  ;;  %v233_v12 = vadd.f32 %v3138_v9, %v3103_v8  ;;  %v493_v9 = vld [vmem:[%s5085_s3] sm:$0x1] }
  0xe6   :  { %v227_v11 = vpop.f32.mrf.mxu1 }
  0xe7   :  { %v228_v14 = vadd.f32 %v227_v11, %v152_v10  ;;  %v2574_v11 = vld [vmem:[%s5080_s1 + $0x278] sm:$0xff] }
 0x104   :  { %v3173_v13 = vpop.f32.mrf.mxu0 }
 0x105   :  { %v4201_v17 = vadd.f32 %v3173_v13, %v233_v12  ;;  %v2573_v13 = vld [vmem:[%s5080_s1 + $0x270] sm:$0xff] }
 0x106   :  { %v321_v18 = vpop.f32.mrf.mxu0 }
 0x107   :  { %v4203_v19 = vadd.f32 %v321_v18, %v228_v14  ;;  %v340_v20 = vmul.f32 %v4201_v17, %v4201_v17  ;;  %v2572_v14 = vld [vmem:[%s5080_s1 + $0x268] sm:$0xff]  ;;  %v2571_v18 = vld [vmem:[%s5080_s1 + $0x260] sm:$0xff] }
 0x109   :  { %v332_v21 = vadd.f32 %v4201_v17, %v4203_v19  ;;  %v339_v22 = vmul.f32 %v4203_v19, %v4203_v19 }
 0x10b   :  { %v333_v23 = vrot.slane %v332_v21, 4  ;;  %v341_v24 = vadd.f32 %v340_v20, %v339_v22  ;;  %v2570_v20 = vld [vmem:[%s5080_s1 + $0x258] sm:$0xff]  ;;  %v2568_v22 = vld [vmem:[%s5080_s1 + $0x248] sm:$0xff] }
 0x10d   :  { %v334_v25 = vadd.f32 %v333_v23, %v332_v21  ;;  %v342_v26 = vrot.slane %v341_v24, 4  ;;  %v2569_v21 = vld [vmem:[%s5080_s1 + $0x250] sm:$0xff]  ;;  %v2567_v23 = vld [vmem:[%s5080_s1 + $0x240] sm:$0xff] }
 0x10f   :  { %v335_v27 = vrot.slane %v334_v25, 2  ;;  %v343_v28 = vadd.f32 %v342_v26, %v341_v24  ;;  %v2566_v24 = vld [vmem:[%s5080_s1 + $0x238] sm:$0xff]  ;;  %v2564_v26 = vld [vmem:[%s5080_s1 + $0x228] sm:$0xff] }
 0x111   :  { %v336_v29 = vadd.f32 %v335_v27, %v334_v25  ;;  %v344_v30 = vrot.slane %v343_v28, 2  ;;  %v2565_v25 = vld [vmem:[%s5080_s1 + $0x230] sm:$0xff]  ;;  %v2552_v27 = vld [vmem:[%s5080_s1 + $0x1c8] sm:$0xff] }
 0x113   :  { %v337_v31 = vrot.slane %v336_v29, 1  ;;  %v345_v32 = vadd.f32 %v344_v30, %v343_v28  ;;  %v2563_v28 = vld [vmem:[%s5080_s1 + $0x220] sm:$0xff]  ;;  %v2562_v30 = vld [vmem:[%s5080_s1 + $0x218] sm:$0xff] }
 0x115   :  { %v338_v33 = vadd.f32 %v337_v31, %v336_v29  ;;  %v346_v34 = vrot.slane %v345_v32, 1  ;;  %v2551_v29 = vld [vmem:[%s5080_s1 + $0x1c0] sm:$0xff]  ;;  %v2550_v31 = vld [vmem:[%s5080_s1 + $0x1b8] sm:$0xff] }
 0x117   :  { %3207 = vmatmul.mubr.f32.vlgmr.msra.gmra.mxu1 %v338_v33  ;;  %v347_v35 = vadd.f32 %v346_v34, %v345_v32  ;;  %v2561_v32 = vld [vmem:[%s5080_s1 + $0x210] sm:$0xff]  ;;  %v2560_v34 = vld [vmem:[%s5080_s1 + $0x208] sm:$0xff] }
 0x118   :  { %3248 = vmatprep.mubr.msk.f32.mxu1 %vm3854_vm0, %v3853_v3  ;;  %3245 = vmatpush3.msra.mxu1 %v4216_v36  ;;  %v2549_v33 = vld [vmem:[%s5080_s1 + $0x1b0] sm:$0xff] }
 0x119   :  { %3242 = vmatmul.mubr.f32.vlgmr.msra.gmra.mxu0 %v347_v35  ;;  %3246 = vmatprep.subr.mxu1 %v3853_v3  ;;  %v2548_v35 = vld [vmem:[%s5080_s1 + $0x1a8] sm:$0xff] }
 0x11a   :  { %3247 = vmatpush3.msra.mxu1 %v4221_v37  ;;  %3294 = vmatpush3.msra.mxu0 %v2558_v38  ;;  %v2559_v38 = vld [vmem:[%s5080_s1 + $0x200] sm:$0xff] }
 0x11b   :  { %3251 = vmatprep.subr.mxu1 %v3853_v3  ;;  %3295 = vmatprep.subr.mxu0 %v2557_v39 }
 0x11c   :  { %3296 = vmatpush3.msra.mxu0 %v2557_v39  ;;  %v2547_v39 = vld [vmem:[%s5080_s1 + $0x1a0] sm:$0xff] }
 0x11d   :  { %3297 = vmatprep.subr.mxu0 %v2556_v40 }
 0x11e   :  { %3298 = vmatpush3.msra.mxu0 %v2556_v40  ;;  %v2590_v40 = vld [vmem:[%s5080_s1 + $0x2f8] sm:$0xff] }
 0x11f   :  { %3299 = vmatprep.subr.mxu0 %v2555_v41 }
 0x120   :  { %3300 = vmatpush3.msra.mxu0 %v2555_v41  ;;  %v2546_v41 = vld [vmem:[%s5080_s1 + $0x198] sm:$0xff] }
 0x121   :  { %3301 = vmatprep.subr.mxu0 %v2554_v42 }
 0x122   :  { %3302 = vmatpush3.msra.mxu0 %v2554_v42  ;;  %v2545_v42 = vld [vmem:[%s5080_s1 + $0x190] sm:$0xff] }
 0x123   :  { %3303 = vmatprep.subr.mxu0 %v2553_v43 }
 0x124   :  { %3304 = vmatpush3.msra.mxu0 %v2553_v43  ;;  %v2544_v43 = vld [vmem:[%s5080_s1 + $0x188] sm:$0xff] }
 0x125   :  { %3305 = vmatprep.subr.mxu0 %v2552_v27 }
 0x126   :  { %3306 = vmatpush3.msra.mxu0 %v2552_v27  ;;  %v2580_v27 = vld [vmem:[%s5080_s1 + $0x2a8] sm:$0xff] }
 0x127   :  { %3307 = vmatprep.subr.mxu0 %v2551_v29 }
 0x128   :  { %3308 = vmatpush3.msra.mxu0 %v2551_v29  ;;  %v2578_v29 = vld [vmem:[%s5080_s1 + $0x298] sm:$0xff] }
 0x129   :  { %3309 = vmatprep.subr.mxu0 %v2550_v31 }
 0x12a   :  { %3310 = vmatpush3.msra.mxu0 %v2550_v31  ;;  %v2576_v31 = vld [vmem:[%s5080_s1 + $0x288] sm:$0xff] }
 0x12b   :  { %3311 = vmatprep.subr.mxu0 %v2549_v33 }
 0x12c   :  { %3312 = vmatpush3.msra.mxu0 %v2549_v33 }
 0x12d   :  { %3313 = vmatprep.subr.mxu0 %v2548_v35 }
 0x12e   :  { %3314 = vmatpush3.msra.mxu0 %v2548_v35 }
 0x12f   :  { %3315 = vmatprep.subr.mxu0 %v2547_v39 }
 0x130   :  { %3316 = vmatpush3.msra.mxu0 %v2547_v39 }
 0x131   :  { %3317 = vmatprep.subr.mxu0 %v2546_v41 }
 0x132   :  { %3318 = vmatpush3.msra.mxu0 %v2546_v41 }
 0x133   :  { %3319 = vmatprep.subr.mxu0 %v2545_v42 }
 0x134   :  { %3320 = vmatpush3.msra.mxu0 %v2545_v42 }
 0x135   :  { %3321 = vmatprep.subr.mxu0 %v2544_v43 }
 0x136   :  { %3322 = vmatpush3.msra.mxu0 %v2544_v43 }
 0x1d7   :  { %v414_v44 = vpop.f32.mrf.mxu1 }
 0x1d8   :  { %v418_v45 = vmul.f32 0.0078125, %v414_v44  ;;  %v2543_v44 = vld [vmem:[%s5080_s1 + $0x180] sm:$0xff] }
 0x1d9   :  { %v3208_v46 = vpop.f32.mrf.mxu1  ;;  %v485_v47 = vpop.f32.mrf.mxu0  ;;  %3323 = vmatprep.subr.mxu0 %v2543_v44 }
 0x1da   :  { %v490_v48 = vmul.f32 %v418_v45, %v418_v45  ;;  %v489_v49 = vmul.f32 0.0078125, %v485_v47  ;;  %3324 = vmatpush3.msra.mxu0 %v2543_v44 }
 0x1db   :  { %v3243_v50 = vpop.f32.mrf.mxu0  ;;  %3363 = vmatprep.subr.mxu0 %v3853_v3 }
 0x1dc   :  { %v491_v51 = vsub.f32 %v489_v49, %v490_v48 }
 0x1de   :  { %v494_v52 = vadd.f32 1e-05, %v491_v51 }
 0x1e0   :  { %3827 = vrsqrt.f32 %v494_v52 }
 0x1ed   :  { %v3828_v54 = vpop.eup %3827 }
 0x1ee   :  { %v496_v8 = vmul.f32 %v3828_v54, %v492_v53 }
 0x1f0   :  { %3249 = vmatmul.mubr.msk.f32.vlgmr.msra.gmra.mxu1 %vm499_vm1, %v496_v8  ;;  %v497_v10 = vmul.f32 %v496_v8, %v418_v45  ;;  %v646_v45 = vlaneseq }
 0x1f1   :  { %3252 = vmatpush3.msra.mxu1 %v4216_v36  ;;  %3255 = vmatprep.mubr.msk.f32.mxu1 %vm3854_vm0, %v3853_v3 }
 0x1f2   :  { %3253 = vmatprep.subr.mxu1 %v3853_v3  ;;  %v498_v12 = vsub.f32 %v493_v9, %v497_v10  ;;  %v647_v46 = vshrl.u32 %v646_v45, 7 }
 0x1f3   :  { %3254 = vmatpush3.msra.mxu1 %v4221_v37 }
 0x1f4   :  { %3256 = vmatmul.mubr.msk.f32.vlgmr.msra.gmra.mxu1 %vm499_vm1, %v498_v12  ;;  %3258 = vmatprep.subr.mxu1 %v2574_v11  ;;  %v4340_v47 = vsub.s32 0, %v647_v46  ;;  %v2608_v46 = vld [vmem:[%s5080_s1 + $0x378] sm:$0xff] }
 0x1f5   :  { %3259 = vmatpush3.msra.mxu1 %v2574_v11 }
 0x1f6   :  { %3260 = vmatprep.subr.mxu1 %v2573_v13 }
 0x1f7   :  { %3261 = vmatpush3.msra.mxu1 %v2573_v13  ;;  %v2589_v13 = vld [vmem:[%s5080_s1 + $0x2f0] sm:$0xff] }
 0x1f8   :  { %3262 = vmatprep.subr.mxu1 %v2572_v14 }
 0x1f9   :  { %3263 = vmatpush3.msra.mxu1 %v2572_v14  ;;  %v2586_v14 = vld [vmem:[%s5080_s1 + $0x2d8] sm:$0xff] }
 0x1fa   :  { %3264 = vmatprep.subr.mxu1 %v2571_v18 }
 0x1fb   :  { %3265 = vmatpush3.msra.mxu1 %v2571_v18 }
 0x1fc   :  { %3266 = vmatprep.subr.mxu1 %v2570_v20 }
 0x1fd   :  { %3267 = vmatpush3.msra.mxu1 %v2570_v20 }
 0x1fe   :  { %3268 = vmatprep.subr.mxu1 %v2569_v21 }
 0x1ff   :  { %3269 = vmatpush3.msra.mxu1 %v2569_v21 }
 0x200   :  { %3270 = vmatprep.subr.mxu1 %v2568_v22 }
 0x201   :  { %3271 = vmatpush3.msra.mxu1 %v2568_v22  ;;  %v2585_v22 = vld [vmem:[%s5080_s1 + $0x2d0] sm:$0xff] }
 0x202   :  { %3272 = vmatprep.subr.mxu1 %v2567_v23 }
 0x203   :  { %3273 = vmatpush3.msra.mxu1 %v2567_v23  ;;  %v2584_v23 = vld [vmem:[%s5080_s1 + $0x2c8] sm:$0xff] }
 0x204   :  { %3274 = vmatprep.subr.mxu1 %v2566_v24 }
 0x205   :  { %3275 = vmatpush3.msra.mxu1 %v2566_v24  ;;  %v2583_v24 = vld [vmem:[%s5080_s1 + $0x2c0] sm:$0xff] }
 0x206   :  { %3276 = vmatprep.subr.mxu1 %v2565_v25 }
 0x207   :  { %3277 = vmatpush3.msra.mxu1 %v2565_v25  ;;  %v2582_v25 = vld [vmem:[%s5080_s1 + $0x2b8] sm:$0xff] }
 0x208   :  { %3278 = vmatprep.subr.mxu1 %v2564_v26 }
 0x209   :  { %3279 = vmatpush3.msra.mxu1 %v2564_v26  ;;  %v2581_v26 = vld [vmem:[%s5080_s1 + $0x2b0] sm:$0xff] }
 0x20a   :  { %3280 = vmatprep.subr.mxu1 %v2563_v28 }
 0x20b   :  { %3281 = vmatpush3.msra.mxu1 %v2563_v28  ;;  %v2579_v28 = vld [vmem:[%s5080_s1 + $0x2a0] sm:$0xff] }
 0x20c   :  { %3282 = vmatprep.subr.mxu1 %v2562_v30 }
 0x20d   :  { %3283 = vmatpush3.msra.mxu1 %v2562_v30  ;;  %v2577_v30 = vld [vmem:[%s5080_s1 + $0x290] sm:$0xff] }
 0x20e   :  { %3284 = vmatprep.subr.mxu1 %v2561_v32 }
 0x20f   :  { %3285 = vmatpush3.msra.mxu1 %v2561_v32  ;;  %v2575_v32 = vld [vmem:[%s5080_s1 + $0x280] sm:$0xff] }
 0x210   :  { %3286 = vmatprep.subr.mxu1 %v2560_v34 }
 0x211   :  { %3287 = vmatpush3.msra.mxu1 %v2560_v34 }
 0x212   :  { %3288 = vmatprep.subr.mxu1 %v2559_v38 }
 0x213   :  { %3289 = vmatpush3.msra.mxu1 %v2559_v38 }
 0x214   :  { %3328 = vmatprep.subr.mxu1 %v2590_v40 }
 0x2b0   :  { %v569_v48 = vpop.f32.mrf.mxu1 }
 0x2b1   :  { %v649_v49 = vrot.slane %v569_v48, %v4340_v47  ;;  %v2607_v48 = vld [vmem:[%s5080_s1 + $0x370] sm:$0xff] }
 0x2b2   :  { %v3250_v50 = vpop.f32.mrf.mxu1 }
 0x2b3   :  { %v650_v52 = vmul.f32 %v649_v49, %v4203_v19  ;;  %v651_v53 = vmul.f32 %v649_v49, %v4201_v17  ;;  %v2588_v17 = vld [vmem:[%s5080_s1 + $0x2e8] sm:$0xff]  ;;  %v2587_v19 = vld [vmem:[%s5080_s1 + $0x2e0] sm:$0xff] }
 0x2b4   :  { %v642_v51 = vpop.f32.mrf.mxu1  ;;  %v2606_v49 = vld [vmem:[%s5080_s1 + $0x368] sm:$0xff]  ;;  %v2605_v50 = vld [vmem:[%s5080_s1 + $0x360] sm:$0xff] }
 0x2b5   :  { %v655_v54 = vrot.slane %v642_v51, %v4340_v47  ;;  %v2604_v51 = vld [vmem:[%s5080_s1 + $0x358] sm:$0xff] }
 0x2b6   :  { %v3257_v8 = vpop.f32.mrf.mxu1 }
 0x2b7   :  { %v656_v9 = vadd.f32 %v655_v54, %v650_v52  ;;  %v657_v10 = vadd.f32 %v655_v54, %v651_v53 }
 0x2b9   :  { %v658_v11 = vmax.f32 %v656_v9, 0.0  ;;  %v659_v12 = vmax.f32 %v657_v10, 0.0 }
 0x2bb   :  { %660 = vst [vmem:[#allocation2 + $0x1] sm:$0xff] %v658_v11  ;;  %661 = vst [vmem:[#allocation2 + $0x11] sm:$0xff] %v659_v12  ;;  %3290 = vmatprep.mubr.f32.mxu1 %v658_v11 }
 0x2bc   :  { %3291 = vmatmul.mubr.f32.vlgmr.msra.gmra.mxu1 %v659_v12 }
 0x2bd   :  { %3329 = vmatpush3.msra.mxu1 %v2590_v40 }
 0x2be   :  { %3330 = vmatprep.subr.mxu1 %v2589_v13 }
 0x2bf   :  { %3331 = vmatpush3.msra.mxu1 %v2589_v13 }
 0x2c0   :  { %3332 = vmatprep.subr.mxu1 %v2588_v17 }
 0x2c1   :  { %3333 = vmatpush3.msra.mxu1 %v2588_v17  ;;  %v1106_v17 = vld [vmem:[%s5084_s2 + $0x1] sm:$0x1] }
 0x2c2   :  { %v662_v18 = vld [vmem:[#allocation2] sm:$0xff]  ;;  %v663_v20 = vld [vmem:[#allocation2 + $0x10] sm:$0xff]  ;;  %3334 = vmatprep.subr.mxu1 %v2587_v19 }
 0x2c3   :  { %v850_v21 = vld [vmem:[#allocation2 + $0x2] sm:$0xff]  ;;  %3325 = vmatprep.mubr.f32.mxu0 %v662_v18  ;;  %3335 = vmatpush3.msra.mxu1 %v2587_v19  ;;  %v851_v33 = vld [vmem:[#allocation2 + $0x12] sm:$0xff]  ;;  %v1107_v18 = vld [vmem:[%s5085_s3 + $0x1] sm:$0x1] }
 0x2c4   :  { %3360 = vmatprep.mubr.f32.mxu1 %v850_v21  ;;  %3326 = vmatmul.mubr.f32.vlgmr.msra.gmra.mxu0 %v663_v20  ;;  %v2624_v21 = vld [vmem:[%s5080_s1 + $0x3f8] sm:$0xff] }
 0x2c5   :  { %3336 = vmatprep.subr.mxu1 %v2586_v14  ;;  %3364 = vmatpush3.msra.mxu0 %v4057_v55 }
 0x2c6   :  { %3337 = vmatpush3.msra.mxu1 %v2586_v14  ;;  %3365 = vmatprep.subr.mxu0 %v3853_v3 }
 0x2c7   :  { %3338 = vmatprep.subr.mxu1 %v2585_v22  ;;  %3366 = vmatpush3.msra.mxu0 %v4062_v56 }
 0x2c8   :  { %3339 = vmatpush3.msra.mxu1 %v2585_v22  ;;  %3367 = vmatprep.subr.mxu0 %v3853_v3 }
 0x2c9   :  { %3340 = vmatprep.subr.mxu1 %v2584_v23  ;;  %3368 = vmatpush3.msra.mxu0 %v4071_v57 }
 0x2ca   :  { %3341 = vmatpush3.msra.mxu1 %v2584_v23  ;;  %3369 = vmatprep.subr.mxu0 %v3853_v3  ;;  %v2623_v23 = vld [vmem:[%s5080_s1 + $0x3f0] sm:$0xff] }
 0x2cb   :  { %3342 = vmatprep.subr.mxu1 %v2583_v24  ;;  %3370 = vmatpush3.msra.mxu0 %v4080_v58 }
 0x2cc   :  { %3343 = vmatpush3.msra.mxu1 %v2583_v24  ;;  %3371 = vmatprep.subr.mxu0 %v3853_v3  ;;  %v2621_v24 = vld [vmem:[%s5080_s1 + $0x3e0] sm:$0xff] }
 0x2cd   :  { %3344 = vmatprep.subr.mxu1 %v2582_v25  ;;  %3372 = vmatpush3.msra.mxu0 %v4089_v59 }
 0x2ce   :  { %3345 = vmatpush3.msra.mxu1 %v2582_v25  ;;  %3373 = vmatprep.subr.mxu0 %v3853_v3  ;;  %v2619_v25 = vld [vmem:[%s5080_s1 + $0x3d0] sm:$0xff] }
 0x2cf   :  { %3346 = vmatprep.subr.mxu1 %v2581_v26  ;;  %3374 = vmatpush3.msra.mxu0 %v4098_v60 }
 0x2d0   :  { %3347 = vmatpush3.msra.mxu1 %v2581_v26  ;;  %3375 = vmatprep.subr.mxu0 %v3853_v3  ;;  %v2618_v26 = vld [vmem:[%s5080_s1 + $0x3c8] sm:$0xff] }
 0x2d1   :  { %3348 = vmatprep.subr.mxu1 %v2580_v27  ;;  %3376 = vmatpush3.msra.mxu0 %v4111_v61 }
 0x2d2   :  { %3349 = vmatpush3.msra.mxu1 %v2580_v27  ;;  %3377 = vmatprep.subr.mxu0 %v3853_v3  ;;  %v2617_v27 = vld [vmem:[%s5080_s1 + $0x3c0] sm:$0xff] }
 0x2d3   :  { %3350 = vmatprep.subr.mxu1 %v2579_v28  ;;  %3378 = vmatpush3.msra.mxu0 %v4119_v62 }
 0x2d4   :  { %3351 = vmatpush3.msra.mxu1 %v2579_v28  ;;  %3379 = vmatprep.subr.mxu0 %v3853_v3  ;;  %v2616_v28 = vld [vmem:[%s5080_s1 + $0x3b8] sm:$0xff] }
 0x2d5   :  { %3352 = vmatprep.subr.mxu1 %v2578_v29  ;;  %3380 = vmatpush3.msra.mxu0 %v4128_v63 }
 0x2d6   :  { %3353 = vmatpush3.msra.mxu1 %v2578_v29  ;;  %3381 = vmatprep.subr.mxu0 %v3853_v3  ;;  %v2615_v29 = vld [vmem:[%s5080_s1 + $0x3b0] sm:$0xff] }
 0x2d7   :  { %3354 = vmatprep.subr.mxu1 %v2577_v30  ;;  %3382 = vmatpush3.msra.mxu0 %v4137_v0 }
 0x2d8   :  { %3355 = vmatpush3.msra.mxu1 %v2577_v30  ;;  %3383 = vmatprep.subr.mxu0 %v3853_v3  ;;  %v2603_v30 = vld [vmem:[%s5080_s1 + $0x350] sm:$0xff] }
 0x2d9   :  { %3356 = vmatprep.subr.mxu1 %v2576_v31  ;;  %3384 = vmatpush3.msra.mxu0 %v4146_v1 }
 0x2da   :  { %3357 = vmatpush3.msra.mxu1 %v2576_v31  ;;  %3385 = vmatprep.subr.mxu0 %v3853_v3  ;;  %v2614_v31 = vld [vmem:[%s5080_s1 + $0x3a8] sm:$0xff] }
 0x2db   :  { %3358 = vmatprep.subr.mxu1 %v2575_v32  ;;  %3386 = vmatpush3.msra.mxu0 %v4155_v2 }
 0x2dc   :  { %3359 = vmatpush3.msra.mxu1 %v2575_v32  ;;  %3387 = vmatprep.subr.mxu0 %v3853_v3  ;;  %v2602_v32 = vld [vmem:[%s5080_s1 + $0x348] sm:$0xff] }
 0x2dd   :  { %3361 = vmatmul.mubr.f32.vlgmr.msra.gmra.mxu1 %v851_v33  ;;  %3398 = vmatprep.subr.mxu1 %v3853_v3  ;;  %v2613_v33 = vld [vmem:[%s5080_s1 + $0x3a0] sm:$0xff] }
 0x2de   :  { %3399 = vmatpush3.msra.mxu1 %v4057_v55  ;;  %3388 = vmatpush3.msra.mxu0 %v4164_v4 }
 0x2df   :  { %3400 = vmatprep.subr.mxu1 %v3853_v3  ;;  %3389 = vmatprep.subr.mxu0 %v3853_v3 }
 0x2e0   :  { %3401 = vmatpush3.msra.mxu1 %v4062_v56  ;;  %3390 = vmatpush3.msra.mxu0 %v4173_v5 }
 0x2e1   :  { %3402 = vmatprep.subr.mxu1 %v3853_v3  ;;  %3391 = vmatprep.subr.mxu0 %v3853_v3 }
 0x2e2   :  { %3403 = vmatpush3.msra.mxu1 %v4071_v57  ;;  %3392 = vmatpush3.msra.mxu0 %v4179_v6 }
 0x2e3   :  { %3404 = vmatprep.subr.mxu1 %v3853_v3  ;;  %3393 = vmatprep.subr.mxu0 %v3853_v3 }
 0x2e4   :  { %3405 = vmatpush3.msra.mxu1 %v4080_v58  ;;  %3394 = vmatpush3.msra.mxu0 %v4188_v7 }
 0x2e5   :  { %3406 = vmatprep.subr.mxu1 %v3853_v3  ;;  %3395 = vmatprep.mubr.msk.f32.mxu0 %vm3854_vm0, %v3853_v3 }
 0x2e6   :  { %3407 = vmatpush3.msra.mxu1 %v4089_v59  ;;  %3430 = vmatprep.mubr.msk.f32.mxu1 %vm3854_vm0, %v3853_v3 }
 0x2e7   :  { %3408 = vmatprep.subr.mxu1 %v3853_v3  ;;  %3433 = vmatprep.subr.mxu0 %v3853_v3 }
 0x2e8   :  { %3409 = vmatpush3.msra.mxu1 %v4098_v60 }
 0x2e9   :  { %3410 = vmatprep.subr.mxu1 %v3853_v3 }
 0x2ea   :  { %3411 = vmatpush3.msra.mxu1 %v4111_v61 }
 0x2eb   :  { %3412 = vmatprep.subr.mxu1 %v3853_v3 }
 0x2ec   :  { %3413 = vmatpush3.msra.mxu1 %v4119_v62 }
 0x2ed   :  { %3414 = vmatprep.subr.mxu1 %v3853_v3 }
 0x2ee   :  { %3415 = vmatpush3.msra.mxu1 %v4128_v63 }
 0x2ef   :  { %3416 = vmatprep.subr.mxu1 %v3853_v3 }
 0x2f0   :  { %3417 = vmatpush3.msra.mxu1 %v4137_v0 }
 0x2f1   :  { %3418 = vmatprep.subr.mxu1 %v3853_v3 }
 0x2f2   :  { %3419 = vmatpush3.msra.mxu1 %v4146_v1 }
 0x2f3   :  { %3420 = vmatprep.subr.mxu1 %v3853_v3 }
 0x2f4   :  { %3421 = vmatpush3.msra.mxu1 %v4155_v2 }
 0x2f5   :  { %3422 = vmatprep.subr.mxu1 %v3853_v3 }
 0x2f6   :  { %3423 = vmatpush3.msra.mxu1 %v4164_v4 }
 0x2f7   :  { %3424 = vmatprep.subr.mxu1 %v3853_v3 }
 0x2f8   :  { %3425 = vmatpush3.msra.mxu1 %v4173_v5 }
 0x2f9   :  { %3426 = vmatprep.subr.mxu1 %v3853_v3 }
 0x2fa   :  { %3427 = vmatpush3.msra.mxu1 %v4179_v6 }
 0x2fb   :  { %3428 = vmatprep.subr.mxu1 %v3853_v3 }
 0x2fc   :  { %3429 = vmatpush3.msra.mxu1 %v4188_v7 }
 0x2fd   :  { %3482 = vmatprep.subr.mxu1 %v2608_v46 }
 0x37c   :  { %v3292_v55 = vpop.f32.mrf.mxu1 }
 0x37e   :  { %v766_v57 = vpop.f32.mrf.mxu1 }
 0x384   :  { %v3327_v56 = vpop.f32.mrf.mxu0 }
 0x385   :  { %v847_v59 = vadd.f32 %v3327_v56, %v3292_v55  ;;  %v2601_v55 = vld [vmem:[%s5080_s1 + $0x340] sm:$0xff]  ;;  %v2612_v56 = vld [vmem:[%s5080_s1 + $0x398] sm:$0xff] }
 0x386   :  { %v841_v58 = vpop.f32.mrf.mxu0 }
 0x387   :  { %v842_v61 = vadd.f32 %v841_v58, %v766_v57  ;;  %v2600_v57 = vld [vmem:[%s5080_s1 + $0x338] sm:$0xff]  ;;  %v2611_v58 = vld [vmem:[%s5080_s1 + $0x390] sm:$0xff] }
 0x39d   :  { %v3362_v60 = vpop.f32.mrf.mxu1 }
 0x39e   :  { %v4459_v62 = vadd.f32 %v3362_v60, %v847_v59  ;;  %v2599_v59 = vld [vmem:[%s5080_s1 + $0x330] sm:$0xff]  ;;  %v2610_v60 = vld [vmem:[%s5080_s1 + $0x388] sm:$0xff] }
 0x39f   :  { %v935_v63 = vpop.f32.mrf.mxu1 }
 0x3a0   :  { %v4461_v0 = vadd.f32 %v935_v63, %v842_v61  ;;  %v954_v1 = vmul.f32 %v4459_v62, %v4459_v62  ;;  %v2598_v61 = vld [vmem:[%s5080_s1 + $0x328] sm:$0xff]  ;;  %v2609_v63 = vld [vmem:[%s5080_s1 + $0x380] sm:$0xff] }
 0x3a2   :  { %v946_v2 = vadd.f32 %v4459_v62, %v4461_v0  ;;  %v953_v4 = vmul.f32 %v4461_v0, %v4461_v0 }
 0x3a4   :  { %v947_v5 = vrot.slane %v946_v2, 4  ;;  %v955_v6 = vadd.f32 %v954_v1, %v953_v4  ;;  %v2597_v1 = vld [vmem:[%s5080_s1 + $0x320] sm:$0xff]  ;;  %v2596_v4 = vld [vmem:[%s5080_s1 + $0x318] sm:$0xff] }
 0x3a6   :  { %v948_v7 = vadd.f32 %v947_v5, %v946_v2  ;;  %v956_v34 = vrot.slane %v955_v6, 4  ;;  %v2640_v2 = vld [vmem:[%s5080_s1 + $0x478] sm:$0xff]  ;;  %v2595_v5 = vld [vmem:[%s5080_s1 + $0x310] sm:$0xff] }
 0x3a8   :  { %v949_v35 = vrot.slane %v948_v7, 2  ;;  %v957_v38 = vadd.f32 %v956_v34, %v955_v6  ;;  %v2594_v6 = vld [vmem:[%s5080_s1 + $0x308] sm:$0xff] }
 0x3aa   :  { %v950_v39 = vadd.f32 %v949_v35, %v948_v7  ;;  %v958_v40 = vrot.slane %v957_v38, 2  ;;  %v2593_v7 = vld [vmem:[%s5080_s1 + $0x300] sm:$0xff] }
 0x3ac   :  { %v951_v41 = vrot.slane %v950_v39, 1  ;;  %v959_v42 = vadd.f32 %v958_v40, %v957_v38 }
 0x3ae   :  { %v952_v43 = vadd.f32 %v951_v41, %v950_v39  ;;  %v960_v44 = vrot.slane %v959_v42, 1 }
 0x3b0   :  { %3396 = vmatmul.mubr.f32.vlgmr.msra.gmra.mxu0 %v952_v43  ;;  %v961_v45 = vadd.f32 %v960_v44, %v959_v42 }
 0x3b1   :  { %3434 = vmatpush3.msra.mxu0 %v4216_v36  ;;  %3437 = vmatprep.mubr.msk.f32.mxu0 %vm3854_vm0, %v3853_v3 }
 0x3b2   :  { %3431 = vmatmul.mubr.f32.vlgmr.msra.gmra.mxu1 %v961_v45  ;;  %3435 = vmatprep.subr.mxu0 %v3853_v3 }
 0x3b3   :  { %3436 = vmatpush3.msra.mxu0 %v4221_v37  ;;  %3483 = vmatpush3.msra.mxu1 %v2608_v46 }
 0x3b4   :  { %3440 = vmatprep.subr.mxu0 %v3853_v3  ;;  %3484 = vmatprep.subr.mxu1 %v2607_v48 }
 0x3b5   :  { %3485 = vmatpush3.msra.mxu1 %v2607_v48 }
 0x3b6   :  { %3486 = vmatprep.subr.mxu1 %v2606_v49 }
 0x3b7   :  { %3487 = vmatpush3.msra.mxu1 %v2606_v49 }
 0x3b8   :  { %3488 = vmatprep.subr.mxu1 %v2605_v50 }
 0x3b9   :  { %3489 = vmatpush3.msra.mxu1 %v2605_v50 }
 0x3ba   :  { %3490 = vmatprep.subr.mxu1 %v2604_v51 }
 0x3bb   :  { %3491 = vmatpush3.msra.mxu1 %v2604_v51 }
 0x3bc   :  { %3492 = vmatprep.subr.mxu1 %v2603_v30 }
 0x3bd   :  { %3493 = vmatpush3.msra.mxu1 %v2603_v30 }
 0x3be   :  { %3494 = vmatprep.subr.mxu1 %v2602_v32 }
 0x3bf   :  { %3495 = vmatpush3.msra.mxu1 %v2602_v32  ;;  %v4745_v32 = vld [vmem:[%s5082_s4 + $0x10] sm:$0xff] }
 0x3c0   :  { %3496 = vmatprep.subr.mxu1 %v2601_v55 }
 0x3c1   :  { %3497 = vmatpush3.msra.mxu1 %v2601_v55  ;;  %v4763_v55 = vld [vmem:[%s5082_s4] sm:$0xff] }
 0x3c2   :  { %3498 = vmatprep.subr.mxu1 %v2600_v57 }
 0x3c3   :  { %3499 = vmatpush3.msra.mxu1 %v2600_v57 }
 0x3c4   :  { %3500 = vmatprep.subr.mxu1 %v2599_v59 }
 0x3c5   :  { %3501 = vmatpush3.msra.mxu1 %v2599_v59 }
 0x3c6   :  { %3502 = vmatprep.subr.mxu1 %v2598_v61 }
 0x3c7   :  { %3503 = vmatpush3.msra.mxu1 %v2598_v61 }
 0x3c8   :  { %3504 = vmatprep.subr.mxu1 %v2597_v1 }
 0x3c9   :  { %3505 = vmatpush3.msra.mxu1 %v2597_v1 }
 0x3ca   :  { %3506 = vmatprep.subr.mxu1 %v2596_v4 }
 0x3cb   :  { %3507 = vmatpush3.msra.mxu1 %v2596_v4 }
 0x3cc   :  { %3508 = vmatprep.subr.mxu1 %v2595_v5 }
 0x3cd   :  { %3509 = vmatpush3.msra.mxu1 %v2595_v5 }
 0x3ce   :  { %3510 = vmatprep.subr.mxu1 %v2594_v6 }
 0x3cf   :  { %3511 = vmatpush3.msra.mxu1 %v2594_v6 }
 0x3d0   :  { %3512 = vmatprep.subr.mxu1 %v2593_v7 }
 0x3d1   :  { %3513 = vmatpush3.msra.mxu1 %v2593_v7 }
 0x3d2   :  { %3552 = vmatprep.subr.mxu1 %v3853_v3 }
 0x470   :  { %v1028_v52 = vpop.f32.mrf.mxu0 }
 0x471   :  { %v1032_v53 = vmul.f32 0.0078125, %v1028_v52 }
 0x472   :  { %v3397_v54 = vpop.f32.mrf.mxu0  ;;  %v1099_v8 = vpop.f32.mrf.mxu1 }
 0x473   :  { %v1104_v9 = vmul.f32 %v1032_v53, %v1032_v53  ;;  %v1103_v10 = vmul.f32 0.0078125, %v1099_v8  ;;  %v2635_v54 = vld [vmem:[%s5080_s1 + $0x450] sm:$0xff]  ;;  %v4620_v8 = vld [vmem:[%s5082_s4 + $0x78] sm:$0xff] }
 0x474   :  { %v3432_v11 = vpop.f32.mrf.mxu1 }
 0x475   :  { %v1105_v12 = vsub.f32 %v1103_v10, %v1104_v9  ;;  %v2634_v9 = vld [vmem:[%s5080_s1 + $0x448] sm:$0xff]  ;;  %v4630_v10 = vld [vmem:[%s5082_s4 + $0x70] sm:$0xff]  ;;  %v2633_v11 = vld [vmem:[%s5080_s1 + $0x440] sm:$0xff] }
 0x477   :  { %v1108_v13 = vadd.f32 1e-05, %v1105_v12  ;;  %v4640_v12 = vld [vmem:[%s5082_s4 + $0x68] sm:$0xff] }
 0x479   :  { %3829 = vrsqrt.f32 %v1108_v13  ;;  %v2632_v13 = vld [vmem:[%s5080_s1 + $0x438] sm:$0xff] }
 0x486   :  { %v3830_v19 = vpop.eup %3829 }
 0x487   :  { %v1110_v14 = vmul.f32 %v3830_v19, %v1106_v17  ;;  %v4650_v17 = vld [vmem:[%s5082_s4 + $0x60] sm:$0xff]  ;;  %v2631_v19 = vld [vmem:[%s5080_s1 + $0x430] sm:$0xff] }
 0x489   :  { %3438 = vmatmul.mubr.msk.f32.vlgmr.msra.gmra.mxu0 %vm499_vm1, %v1110_v14  ;;  %v1111_v20 = vmul.f32 %v1110_v14, %v1032_v53  ;;  %v4660_v14 = vld [vmem:[%s5082_s4 + $0x58] sm:$0xff] }
 0x48a   :  { %3441 = vmatpush3.msra.mxu0 %v4216_v36  ;;  %3444 = vmatprep.mubr.msk.f32.mxu0 %vm3854_vm0, %v3853_v3  ;;  %v2622_v36 = vld [vmem:[%s5080_s1 + $0x3e8] sm:$0xff] }
 0x48b   :  { %3442 = vmatprep.subr.mxu0 %v3853_v3  ;;  %v1112_v22 = vsub.f32 %v1107_v18, %v1111_v20  ;;  %v2630_v18 = vld [vmem:[%s5080_s1 + $0x428] sm:$0xff]  ;;  %v4670_v20 = vld [vmem:[%s5082_s4 + $0x50] sm:$0xff] }
 0x48c   :  { %3443 = vmatpush3.msra.mxu0 %v4221_v37  ;;  %v2620_v37 = vld [vmem:[%s5080_s1 + $0x3d8] sm:$0xff] }
 0x48d   :  { %3445 = vmatmul.mubr.msk.f32.vlgmr.msra.gmra.mxu0 %vm499_vm1, %v1112_v22  ;;  %3447 = vmatprep.subr.mxu0 %v2624_v21  ;;  %v4680_v22 = vld [vmem:[%s5082_s4 + $0x48] sm:$0xff] }
 0x48e   :  { %3448 = vmatpush3.msra.mxu0 %v2624_v21  ;;  %v2629_v21 = vld [vmem:[%s5080_s1 + $0x420] sm:$0xff] }
 0x48f   :  { %3449 = vmatprep.subr.mxu0 %v2623_v23 }
 0x490   :  { %3450 = vmatpush3.msra.mxu0 %v2623_v23  ;;  %v2628_v23 = vld [vmem:[%s5080_s1 + $0x418] sm:$0xff] }
 0x491   :  { %3451 = vmatprep.subr.mxu0 %v2622_v36 }
 0x492   :  { %3452 = vmatpush3.msra.mxu0 %v2622_v36  ;;  %v4690_v36 = vld [vmem:[%s5082_s4 + $0x40] sm:$0xff] }
 0x493   :  { %3453 = vmatprep.subr.mxu0 %v2621_v24 }
 0x494   :  { %3454 = vmatpush3.msra.mxu0 %v2621_v24  ;;  %v2627_v24 = vld [vmem:[%s5080_s1 + $0x410] sm:$0xff] }
 0x495   :  { %3455 = vmatprep.subr.mxu0 %v2620_v37 }
 0x496   :  { %3456 = vmatpush3.msra.mxu0 %v2620_v37  ;;  %v4700_v37 = vld [vmem:[%s5082_s4 + $0x38] sm:$0xff] }
 0x497   :  { %3457 = vmatprep.subr.mxu0 %v2619_v25 }
 0x498   :  { %3458 = vmatpush3.msra.mxu0 %v2619_v25  ;;  %v2626_v25 = vld [vmem:[%s5080_s1 + $0x408] sm:$0xff] }
 0x499   :  { %3459 = vmatprep.subr.mxu0 %v2618_v26 }
 0x49a   :  { %3460 = vmatpush3.msra.mxu0 %v2618_v26  ;;  %v4710_v26 = vld [vmem:[%s5082_s4 + $0x30] sm:$0xff] }
 0x49b   :  { %3461 = vmatprep.subr.mxu0 %v2617_v27 }
 0x49c   :  { %3462 = vmatpush3.msra.mxu0 %v2617_v27  ;;  %v2625_v27 = vld [vmem:[%s5080_s1 + $0x400] sm:$0xff] }
 0x49d   :  { %3463 = vmatprep.subr.mxu0 %v2616_v28 }
 0x49e   :  { %3464 = vmatpush3.msra.mxu0 %v2616_v28  ;;  %v4720_v28 = vld [vmem:[%s5082_s4 + $0x28] sm:$0xff] }
 0x49f   :  { %3465 = vmatprep.subr.mxu0 %v2615_v29 }
 0x4a0   :  { %3466 = vmatpush3.msra.mxu0 %v2615_v29  ;;  %v4727_v29 = vld [vmem:[%s5082_s4 + $0x20] sm:$0xff] }
 0x4a1   :  { %3467 = vmatprep.subr.mxu0 %v2614_v31 }
 0x4a2   :  { %3468 = vmatpush3.msra.mxu0 %v2614_v31  ;;  %v4736_v31 = vld [vmem:[%s5082_s4 + $0x18] sm:$0xff] }
 0x4a3   :  { %3469 = vmatprep.subr.mxu0 %v2613_v33 }
 0x4a4   :  { %3470 = vmatpush3.msra.mxu0 %v2613_v33  ;;  %v4754_v33 = vld [vmem:[%s5082_s4 + $0x8] sm:$0xff] }
 0x4a5   :  { %3471 = vmatprep.subr.mxu0 %v2612_v56 }
 0x4a6   :  { %3472 = vmatpush3.msra.mxu0 %v2612_v56 }
 0x4a7   :  { %3473 = vmatprep.subr.mxu0 %v2611_v58 }
 0x4a8   :  { %3474 = vmatpush3.msra.mxu0 %v2611_v58 }
 0x4a9   :  { %3475 = vmatprep.subr.mxu0 %v2610_v60 }
 0x4aa   :  { %3476 = vmatpush3.msra.mxu0 %v2610_v60 }
 0x4ab   :  { %3477 = vmatprep.subr.mxu0 %v2609_v63 }
 0x4ac   :  { %3478 = vmatpush3.msra.mxu0 %v2609_v63 }
 0x4ad   :  { %3517 = vmatprep.subr.mxu0 %v2640_v2 }
 0x549   :  { %v1182_v34 = vpop.f32.mrf.mxu0 }
 0x54a   :  { %v1262_v35 = vrot.slane %v1182_v34, %v4340_v47 }
 0x54b   :  { %v3439_v38 = vpop.f32.mrf.mxu0 }
 0x54c   :  { %v1263_v40 = vmul.f32 %v1262_v35, %v4461_v0  ;;  %v1264_v41 = vmul.f32 %v1262_v35, %v4459_v62  ;;  %v2639_v62 = vld [vmem:[%s5080_s1 + $0x470] sm:$0xff]  ;;  %v2636_v0 = vld [vmem:[%s5080_s1 + $0x458] sm:$0xff] }
 0x54d   :  { %v1255_v39 = vpop.f32.mrf.mxu0 }
 0x54e   :  { %v1268_v42 = vrot.slane %v1255_v39, %v4340_v47 }
 0x54f   :  { %v3446_v43 = vpop.f32.mrf.mxu0 }
 0x550   :  { %v1269_v44 = vadd.f32 %v1268_v42, %v1263_v40  ;;  %v1270_v45 = vadd.f32 %v1268_v42, %v1264_v41 }
 0x552   :  { %v1271_v46 = vadd.f32 %v1269_v44, %v3939_v15  ;;  %v1272_v48 = vadd.f32 %v1270_v45, %v3945_v16  ;;  %v2638_v15 = vld [vmem:[%s5080_s1 + $0x468] sm:$0xff]  ;;  %v2637_v16 = vld [vmem:[%s5080_s1 + $0x460] sm:$0xff] }
 0x554   :  { %v4594_v49 = vmax.f32 %v1271_v46, 0.0  ;;  %v4596_v50 = vmax.f32 %v1272_v48, 0.0 }
 0x556   :  { %1275 = vst [vmem:[#allocation2 + $0x1] sm:$0xff] %v4594_v49  ;;  %1276 = vst [vmem:[#allocation2 + $0x11] sm:$0xff] %v4596_v50  ;;  %3479 = vmatprep.mubr.f32.mxu0 %v4594_v49 }
 0x557   :  { %3480 = vmatmul.mubr.f32.vlgmr.msra.gmra.mxu0 %v4596_v50 }
 0x558   :  { %3518 = vmatpush3.msra.mxu0 %v2640_v2 }
 0x559   :  { %3519 = vmatprep.subr.mxu0 %v2639_v62 }
 0x55a   :  { %3520 = vmatpush3.msra.mxu0 %v2639_v62 }
 0x55b   :  { %3521 = vmatprep.subr.mxu0 %v2638_v15 }
 0x55c   :  { %3522 = vmatpush3.msra.mxu0 %v2638_v15  ;;  %v4808_v15 = vld [vmem:[%s5083_s5 + $0x8] sm:$0xff] }
 0x55d   :  { %v1277_v51 = vld [vmem:[#allocation2] sm:$0xff]  ;;  %v1278_v52 = vld [vmem:[#allocation2 + $0x10] sm:$0xff]  ;;  %3523 = vmatprep.subr.mxu0 %v2637_v16 }
 0x55e   :  { %v1465_v53 = vld [vmem:[#allocation2 + $0x2] sm:$0xff]  ;;  %3514 = vmatprep.mubr.f32.mxu1 %v1277_v51  ;;  %3524 = vmatpush3.msra.mxu0 %v2637_v16  ;;  %v1466_v30 = vld [vmem:[#allocation2 + $0x12] sm:$0xff] }
 0x55f   :  { %3549 = vmatprep.mubr.f32.mxu0 %v1465_v53  ;;  %3515 = vmatmul.mubr.f32.vlgmr.msra.gmra.mxu1 %v1278_v52  ;;  %v4817_v16 = vld [vmem:[%s5083_s5] sm:$0xff]  ;;  %v2657_v51 = vld [vmem:[%s5080_s1 + $0x4f0] sm:$0xff]  ;;  %v2656_v52 = vld [vmem:[%s5080_s1 + $0x4e8] sm:$0xff] }
 0x560   :  { %3525 = vmatprep.subr.mxu0 %v2636_v0  ;;  %3553 = vmatpush3.msra.mxu1 %v4620_v8  ;;  %v2655_v53 = vld [vmem:[%s5080_s1 + $0x4e0] sm:$0xff] }
 0x561   :  { %3526 = vmatpush3.msra.mxu0 %v2636_v0  ;;  %3554 = vmatprep.subr.mxu1 %v3853_v3  ;;  %v2658_v0 = vld [vmem:[%s5080_s1 + $0x4f8] sm:$0xff] }
 0x562   :  { %3527 = vmatprep.subr.mxu0 %v2635_v54  ;;  %3555 = vmatpush3.msra.mxu1 %v4630_v10 }
 0x563   :  { %3528 = vmatpush3.msra.mxu0 %v2635_v54  ;;  %3556 = vmatprep.subr.mxu1 %v3853_v3  ;;  %v2654_v54 = vld [vmem:[%s5080_s1 + $0x4d8] sm:$0xff] }
 0x564   :  { %3529 = vmatprep.subr.mxu0 %v2634_v9  ;;  %3557 = vmatpush3.msra.mxu1 %v4640_v12 }
 0x565   :  { %3530 = vmatpush3.msra.mxu0 %v2634_v9  ;;  %3558 = vmatprep.subr.mxu1 %v3853_v3  ;;  %v2653_v9 = vld [vmem:[%s5080_s1 + $0x4d0] sm:$0xff] }
 0x566   :  { %3531 = vmatprep.subr.mxu0 %v2633_v11  ;;  %3559 = vmatpush3.msra.mxu1 %v4650_v17 }
 0x567   :  { %3532 = vmatpush3.msra.mxu0 %v2633_v11  ;;  %3560 = vmatprep.subr.mxu1 %v3853_v3 }
 0x568   :  { %3533 = vmatprep.subr.mxu0 %v2632_v13  ;;  %3561 = vmatpush3.msra.mxu1 %v4660_v14 }
 0x569   :  { %3534 = vmatpush3.msra.mxu0 %v2632_v13  ;;  %3562 = vmatprep.subr.mxu1 %v3853_v3 }
 0x56a   :  { %3535 = vmatprep.subr.mxu0 %v2631_v19  ;;  %3563 = vmatpush3.msra.mxu1 %v4670_v20 }
 0x56b   :  { %3536 = vmatpush3.msra.mxu0 %v2631_v19  ;;  %3564 = vmatprep.subr.mxu1 %v3853_v3 }
 0x56c   :  { %3537 = vmatprep.subr.mxu0 %v2630_v18  ;;  %3565 = vmatpush3.msra.mxu1 %v4680_v22 }
 0x56d   :  { %3538 = vmatpush3.msra.mxu0 %v2630_v18  ;;  %3566 = vmatprep.subr.mxu1 %v3853_v3 }
 0x56e   :  { %3539 = vmatprep.subr.mxu0 %v2629_v21  ;;  %3567 = vmatpush3.msra.mxu1 %v4690_v36 }
 0x56f   :  { %3540 = vmatpush3.msra.mxu0 %v2629_v21  ;;  %3568 = vmatprep.subr.mxu1 %v3853_v3 }
 0x570   :  { %3541 = vmatprep.subr.mxu0 %v2628_v23  ;;  %3569 = vmatpush3.msra.mxu1 %v4700_v37 }
 0x571   :  { %3542 = vmatpush3.msra.mxu0 %v2628_v23  ;;  %3570 = vmatprep.subr.mxu1 %v3853_v3 }
 0x572   :  { %3543 = vmatprep.subr.mxu0 %v2627_v24  ;;  %3571 = vmatpush3.msra.mxu1 %v4710_v26 }
 0x573   :  { %3544 = vmatpush3.msra.mxu0 %v2627_v24  ;;  %3572 = vmatprep.subr.mxu1 %v3853_v3 }
 0x574   :  { %3545 = vmatprep.subr.mxu0 %v2626_v25  ;;  %3573 = vmatpush3.msra.mxu1 %v4720_v28 }
 0x575   :  { %3546 = vmatpush3.msra.mxu0 %v2626_v25  ;;  %3574 = vmatprep.subr.mxu1 %v3853_v3 }
 0x576   :  { %3547 = vmatprep.subr.mxu0 %v2625_v27  ;;  %3575 = vmatpush3.msra.mxu1 %v4727_v29 }
 0x577   :  { %3548 = vmatpush3.msra.mxu0 %v2625_v27  ;;  %3576 = vmatprep.subr.mxu1 %v3853_v3 }
 0x578   :  { %3550 = vmatmul.mubr.f32.vlgmr.msra.gmra.mxu0 %v1466_v30  ;;  %3587 = vmatprep.subr.mxu0 %v3853_v3  ;;  %v1721_v30 = vld [vmem:[%s5084_s2 + $0x2] sm:$0x1] }
 0x579   :  { %3588 = vmatpush3.msra.mxu0 %v4620_v8  ;;  %3577 = vmatpush3.msra.mxu1 %v4736_v31 }
 0x57a   :  { %3589 = vmatprep.subr.mxu0 %v3853_v3  ;;  %3578 = vmatprep.subr.mxu1 %v3853_v3 }
 0x57b   :  { %3590 = vmatpush3.msra.mxu0 %v4630_v10  ;;  %3579 = vmatpush3.msra.mxu1 %v4745_v32 }
 0x57c   :  { %3591 = vmatprep.subr.mxu0 %v3853_v3  ;;  %3580 = vmatprep.subr.mxu1 %v3853_v3 }
 0x57d   :  { %3592 = vmatpush3.msra.mxu0 %v4640_v12  ;;  %3581 = vmatpush3.msra.mxu1 %v4754_v33 }
 0x57e   :  { %3593 = vmatprep.subr.mxu0 %v3853_v3  ;;  %3582 = vmatprep.subr.mxu1 %v3853_v3 }
 0x57f   :  { %3594 = vmatpush3.msra.mxu0 %v4650_v17  ;;  %3583 = vmatpush3.msra.mxu1 %v4763_v55 }
 0x580   :  { %3595 = vmatprep.subr.mxu0 %v3853_v3  ;;  %3584 = vmatprep.mubr.msk.f32.mxu1 %vm3854_vm0, %v3853_v3 }
 0x581   :  { %3596 = vmatpush3.msra.mxu0 %v4660_v14  ;;  %3619 = vmatprep.mubr.msk.f32.mxu0 %vm3854_vm0, %v3853_v3 }
 0x582   :  { %3597 = vmatprep.subr.mxu0 %v3853_v3  ;;  %3622 = vmatprep.subr.mxu1 %v3853_v3 }
 0x583   :  { %3598 = vmatpush3.msra.mxu0 %v4670_v20 }
 0x584   :  { %3599 = vmatprep.subr.mxu0 %v3853_v3 }
 0x585   :  { %3600 = vmatpush3.msra.mxu0 %v4680_v22 }
 0x586   :  { %3601 = vmatprep.subr.mxu0 %v3853_v3 }
 0x587   :  { %3602 = vmatpush3.msra.mxu0 %v4690_v36 }
 0x588   :  { %3603 = vmatprep.subr.mxu0 %v3853_v3 }
 0x589   :  { %3604 = vmatpush3.msra.mxu0 %v4700_v37 }
 0x58a   :  { %3605 = vmatprep.subr.mxu0 %v3853_v3 }
 0x58b   :  { %3606 = vmatpush3.msra.mxu0 %v4710_v26 }
 0x58c   :  { %3607 = vmatprep.subr.mxu0 %v3853_v3 }
 0x58d   :  { %3608 = vmatpush3.msra.mxu0 %v4720_v28 }
 0x58e   :  { %3609 = vmatprep.subr.mxu0 %v3853_v3 }
 0x58f   :  { %3610 = vmatpush3.msra.mxu0 %v4727_v29 }
 0x590   :  { %3611 = vmatprep.subr.mxu0 %v3853_v3 }
 0x591   :  { %3612 = vmatpush3.msra.mxu0 %v4736_v31 }
 0x592   :  { %3613 = vmatprep.subr.mxu0 %v3853_v3 }
 0x593   :  { %3614 = vmatpush3.msra.mxu0 %v4745_v32 }
 0x594   :  { %3615 = vmatprep.subr.mxu0 %v3853_v3 }
 0x595   :  { %3616 = vmatpush3.msra.mxu0 %v4754_v33 }
 0x596   :  { %3617 = vmatprep.subr.mxu0 %v3853_v3 }
 0x597   :  { %3618 = vmatpush3.msra.mxu0 %v4763_v55 }
 0x598   :  { %3671 = vmatprep.subr.mxu0 %v2658_v0 }
 0x617   :  { %v3481_v56 = vpop.f32.mrf.mxu0 }
 0x619   :  { %v1381_v58 = vpop.f32.mrf.mxu0 }
 0x61f   :  { %v3516_v57 = vpop.f32.mrf.mxu1 }
 0x620   :  { %v1462_v60 = vadd.f32 %v3516_v57, %v3481_v56 }
 0x621   :  { %v1456_v59 = vpop.f32.mrf.mxu1 }
 0x622   :  { %v1457_v63 = vadd.f32 %v1456_v59, %v1381_v58  ;;  %v1722_v58 = vld [vmem:[%s5085_s3 + $0x2] sm:$0x1] }
 0x638   :  { %v3551_v61 = vpop.f32.mrf.mxu0 }
 0x639   :  { %v4795_v1 = vadd.f32 %v3551_v61, %v1462_v60  ;;  %v2674_v60 = vld [vmem:[%s5080_s1 + $0x578] sm:$0xff] }
 0x63a   :  { %v1550_v2 = vpop.f32.mrf.mxu0 }
 0x63b   :  { %v4797_v4 = vadd.f32 %v1550_v2, %v1457_v63  ;;  %v1569_v5 = vmul.f32 %v4795_v1, %v4795_v1  ;;  %v2673_v63 = vld [vmem:[%s5080_s1 + $0x570] sm:$0xff]  ;;  %v2672_v2 = vld [vmem:[%s5080_s1 + $0x568] sm:$0xff] }
 0x63d   :  { %v1561_v6 = vadd.f32 %v4795_v1, %v4797_v4  ;;  %v1568_v7 = vmul.f32 %v4797_v4, %v4797_v4 }
 0x63f   :  { %v1562_v34 = vrot.slane %v1561_v6, 4  ;;  %v1570_v35 = vadd.f32 %v1569_v5, %v1568_v7  ;;  %v2671_v5 = vld [vmem:[%s5080_s1 + $0x560] sm:$0xff]  ;;  %v2669_v7 = vld [vmem:[%s5080_s1 + $0x550] sm:$0xff] }
 0x641   :  { %v1563_v38 = vadd.f32 %v1562_v34, %v1561_v6  ;;  %v1571_v39 = vrot.slane %v1570_v35, 4  ;;  %v2670_v6 = vld [vmem:[%s5080_s1 + $0x558] sm:$0xff]  ;;  %v2668_v34 = vld [vmem:[%s5080_s1 + $0x548] sm:$0xff] }
 0x643   :  { %v1564_v40 = vrot.slane %v1563_v38, 2  ;;  %v1572_v41 = vadd.f32 %v1571_v39, %v1570_v35  ;;  %v2667_v35 = vld [vmem:[%s5080_s1 + $0x540] sm:$0xff]  ;;  %v2665_v39 = vld [vmem:[%s5080_s1 + $0x530] sm:$0xff] }
 0x645   :  { %v1565_v42 = vadd.f32 %v1564_v40, %v1563_v38  ;;  %v1573_v43 = vrot.slane %v1572_v41, 2  ;;  %v2666_v38 = vld [vmem:[%s5080_s1 + $0x538] sm:$0xff]  ;;  %v2664_v40 = vld [vmem:[%s5080_s1 + $0x528] sm:$0xff] }
 0x647   :  { %v1566_v44 = vrot.slane %v1565_v42, 1  ;;  %v1574_v45 = vadd.f32 %v1573_v43, %v1572_v41  ;;  %v2652_v41 = vld [vmem:[%s5080_s1 + $0x4c8] sm:$0xff]  ;;  %v2651_v43 = vld [vmem:[%s5080_s1 + $0x4c0] sm:$0xff] }
 0x649   :  { %v1567_v46 = vadd.f32 %v1566_v44, %v1565_v42  ;;  %v1575_v48 = vrot.slane %v1574_v45, 1  ;;  %v2663_v42 = vld [vmem:[%s5080_s1 + $0x520] sm:$0xff]  ;;  %v2662_v44 = vld [vmem:[%s5080_s1 + $0x518] sm:$0xff] }
 0x64b   :  { %3585 = vmatmul.mubr.f32.vlgmr.msra.gmra.mxu1 %v1567_v46  ;;  %v1576_v62 = vadd.f32 %v1575_v48, %v1574_v45  ;;  %v2650_v45 = vld [vmem:[%s5080_s1 + $0x4b8] sm:$0xff]  ;;  %v2661_v46 = vld [vmem:[%s5080_s1 + $0x510] sm:$0xff] }
 0x64c   :  { %3623 = vmatpush3.msra.mxu1 %v4808_v15  ;;  %3626 = vmatprep.mubr.msk.f32.mxu1 %vm3854_vm0, %v3853_v3  ;;  %v2649_v48 = vld [vmem:[%s5080_s1 + $0x4b0] sm:$0xff] }
 0x64d   :  { %3620 = vmatmul.mubr.f32.vlgmr.msra.gmra.mxu0 %v1576_v62  ;;  %3624 = vmatprep.subr.mxu1 %v3853_v3  ;;  %v2660_v62 = vld [vmem:[%s5080_s1 + $0x508] sm:$0xff] }
 0x64e   :  { %3625 = vmatpush3.msra.mxu1 %v4817_v16  ;;  %3672 = vmatpush3.msra.mxu0 %v2658_v0  ;;  %v2648_v0 = vld [vmem:[%s5080_s1 + $0x4a8] sm:$0xff] }
 0x64f   :  { %3629 = vmatprep.subr.mxu1 %v3853_v3  ;;  %3673 = vmatprep.subr.mxu0 %v2657_v51 }
 0x650   :  { %3674 = vmatpush3.msra.mxu0 %v2657_v51  ;;  %v2659_v51 = vld [vmem:[%s5080_s1 + $0x500] sm:$0xff] }
 0x651   :  { %3675 = vmatprep.subr.mxu0 %v2656_v52 }
 0x652   :  { %3676 = vmatpush3.msra.mxu0 %v2656_v52  ;;  %v2647_v52 = vld [vmem:[%s5080_s1 + $0x4a0] sm:$0xff] }
 0x653   :  { %3677 = vmatprep.subr.mxu0 %v2655_v53 }
 0x654   :  { %3678 = vmatpush3.msra.mxu0 %v2655_v53  ;;  %v2690_v53 = vld [vmem:[%s5080_s1 + $0x5f8] sm:$0xff] }
 0x655   :  { %3679 = vmatprep.subr.mxu0 %v2654_v54 }
 0x656   :  { %3680 = vmatpush3.msra.mxu0 %v2654_v54  ;;  %v2646_v54 = vld [vmem:[%s5080_s1 + $0x498] sm:$0xff] }
 0x657   :  { %3681 = vmatprep.subr.mxu0 %v2653_v9 }
 0x658   :  { %3682 = vmatpush3.msra.mxu0 %v2653_v9  ;;  %v2645_v9 = vld [vmem:[%s5080_s1 + $0x490] sm:$0xff] }
 0x659   :  { %3683 = vmatprep.subr.mxu0 %v2652_v41 }
 0x65a   :  { %3684 = vmatpush3.msra.mxu0 %v2652_v41  ;;  %v2678_v41 = vld [vmem:[%s5080_s1 + $0x598] sm:$0xff] }
 0x65b   :  { %3685 = vmatprep.subr.mxu0 %v2651_v43 }
 0x65c   :  { %3686 = vmatpush3.msra.mxu0 %v2651_v43  ;;  %v2676_v43 = vld [vmem:[%s5080_s1 + $0x588] sm:$0xff] }
 0x65d   :  { %3687 = vmatprep.subr.mxu0 %v2650_v45 }
 0x65e   :  { %3688 = vmatpush3.msra.mxu0 %v2650_v45 }
 0x65f   :  { %3689 = vmatprep.subr.mxu0 %v2649_v48 }
 0x660   :  { %3690 = vmatpush3.msra.mxu0 %v2649_v48 }
 0x661   :  { %3691 = vmatprep.subr.mxu0 %v2648_v0 }
 0x662   :  { %3692 = vmatpush3.msra.mxu0 %v2648_v0 }
 0x663   :  { %3693 = vmatprep.subr.mxu0 %v2647_v52 }
 0x664   :  { %3694 = vmatpush3.msra.mxu0 %v2647_v52 }
 0x665   :  { %3695 = vmatprep.subr.mxu0 %v2646_v54 }
 0x666   :  { %3696 = vmatpush3.msra.mxu0 %v2646_v54 }
 0x667   :  { %3697 = vmatprep.subr.mxu0 %v2645_v9 }
 0x668   :  { %3698 = vmatpush3.msra.mxu0 %v2645_v9 }
 0x70b   :  { %v1643_v11 = vpop.f32.mrf.mxu1 }
 0x70c   :  { %v1647_v13 = vmul.f32 0.0078125, %v1643_v11  ;;  %v2644_v11 = vld [vmem:[%s5080_s1 + $0x488] sm:$0xff] }
 0x70d   :  { %v3586_v19 = vpop.f32.mrf.mxu1  ;;  %v1714_v18 = vpop.f32.mrf.mxu0  ;;  %3699 = vmatprep.subr.mxu0 %v2644_v11 }
 0x70e   :  { %v1719_v21 = vmul.f32 %v1647_v13, %v1647_v13  ;;  %v1718_v23 = vmul.f32 0.0078125, %v1714_v18  ;;  %3700 = vmatpush3.msra.mxu0 %v2644_v11 }
 0x70f   :  { %v3621_v24 = vpop.f32.mrf.mxu0 }
 0x710   :  { %v1720_v25 = vsub.f32 %v1718_v23, %v1719_v21 }
 0x712   :  { %v1723_v27 = vadd.f32 1e-05, %v1720_v25 }
 0x714   :  { %3831 = vrsqrt.f32 %v1723_v27 }
 0x721   :  { %v3832_v56 = vpop.eup %3831 }
 0x722   :  { %v1725_v57 = vmul.f32 %v3832_v56, %v1721_v30 }
 0x724   :  { %3627 = vmatmul.mubr.msk.f32.vlgmr.msra.gmra.mxu1 %vm499_vm1, %v1725_v57  ;;  %v1726_v59 = vmul.f32 %v1725_v57, %v1647_v13  ;;  %v2643_v13 = vld [vmem:[%s5080_s1 + $0x480] sm:$0xff] }
 0x725   :  { %3630 = vmatpush3.msra.mxu1 %v4808_v15  ;;  %3633 = vmatprep.mubr.msk.f32.mxu1 %vm3854_vm0, %v3853_v3 }
 0x726   :  { %3631 = vmatprep.subr.mxu1 %v3853_v3  ;;  %v1727_v61 = vsub.f32 %v1722_v58, %v1726_v59  ;;  %3701 = vmatprep.subr.mxu0 %v2643_v13 }
 0x727   :  { %3632 = vmatpush3.msra.mxu1 %v4817_v16  ;;  %3702 = vmatpush3.msra.mxu0 %v2643_v13 }
 0x728   :  { %3634 = vmatmul.mubr.msk.f32.vlgmr.msra.gmra.mxu1 %vm499_vm1, %v1727_v61  ;;  %3636 = vmatprep.subr.mxu1 %v2674_v60  ;;  %v2686_v61 = vld [vmem:[%s5080_s1 + $0x5d8] sm:$0xff] }
 0x729   :  { %3637 = vmatpush3.msra.mxu1 %v2674_v60  ;;  %3741 = vmatprep.subr.mxu0 %v3853_v3  ;;  %v2689_v60 = vld [vmem:[%s5080_s1 + $0x5f0] sm:$0xff] }
 0x72a   :  { %3638 = vmatprep.subr.mxu1 %v2673_v63 }
 0x72b   :  { %3639 = vmatpush3.msra.mxu1 %v2673_v63 }
 0x72c   :  { %3640 = vmatprep.subr.mxu1 %v2672_v2 }
 0x72d   :  { %3641 = vmatpush3.msra.mxu1 %v2672_v2 }
 0x72e   :  { %3642 = vmatprep.subr.mxu1 %v2671_v5 }
 0x72f   :  { %3643 = vmatpush3.msra.mxu1 %v2671_v5 }
 0x730   :  { %3644 = vmatprep.subr.mxu1 %v2670_v6 }
 0x731   :  { %3645 = vmatpush3.msra.mxu1 %v2670_v6  ;;  %v2685_v6 = vld [vmem:[%s5080_s1 + $0x5d0] sm:$0xff] }
 0x732   :  { %3646 = vmatprep.subr.mxu1 %v2669_v7 }
 0x733   :  { %3647 = vmatpush3.msra.mxu1 %v2669_v7  ;;  %v2684_v7 = vld [vmem:[%s5080_s1 + $0x5c8] sm:$0xff] }
 0x734   :  { %3648 = vmatprep.subr.mxu1 %v2668_v34 }
 0x735   :  { %3649 = vmatpush3.msra.mxu1 %v2668_v34  ;;  %v2683_v34 = vld [vmem:[%s5080_s1 + $0x5c0] sm:$0xff] }
 0x736   :  { %3650 = vmatprep.subr.mxu1 %v2667_v35 }
 0x737   :  { %3651 = vmatpush3.msra.mxu1 %v2667_v35  ;;  %v2682_v35 = vld [vmem:[%s5080_s1 + $0x5b8] sm:$0xff] }
 0x738   :  { %3652 = vmatprep.subr.mxu1 %v2666_v38 }
 0x739   :  { %3653 = vmatpush3.msra.mxu1 %v2666_v38  ;;  %v2681_v38 = vld [vmem:[%s5080_s1 + $0x5b0] sm:$0xff] }
 0x73a   :  { %3654 = vmatprep.subr.mxu1 %v2665_v39 }
 0x73b   :  { %3655 = vmatpush3.msra.mxu1 %v2665_v39  ;;  %v2680_v39 = vld [vmem:[%s5080_s1 + $0x5a8] sm:$0xff] }
 0x73c   :  { %3656 = vmatprep.subr.mxu1 %v2664_v40 }
 0x73d   :  { %3657 = vmatpush3.msra.mxu1 %v2664_v40  ;;  %v2679_v40 = vld [vmem:[%s5080_s1 + $0x5a0] sm:$0xff] }
 0x73e   :  { %3658 = vmatprep.subr.mxu1 %v2663_v42 }
 0x73f   :  { %3659 = vmatpush3.msra.mxu1 %v2663_v42  ;;  %v2677_v42 = vld [vmem:[%s5080_s1 + $0x590] sm:$0xff] }
 0x740   :  { %3660 = vmatprep.subr.mxu1 %v2662_v44 }
 0x741   :  { %3661 = vmatpush3.msra.mxu1 %v2662_v44  ;;  %v2675_v44 = vld [vmem:[%s5080_s1 + $0x580] sm:$0xff] }
 0x742   :  { %3662 = vmatprep.subr.mxu1 %v2661_v46 }
 0x743   :  { %3663 = vmatpush3.msra.mxu1 %v2661_v46 }
 0x744   :  { %3664 = vmatprep.subr.mxu1 %v2660_v62 }
 0x745   :  { %3665 = vmatpush3.msra.mxu1 %v2660_v62 }
 0x746   :  { %3666 = vmatprep.subr.mxu1 %v2659_v51 }
 0x747   :  { %3667 = vmatpush3.msra.mxu1 %v2659_v51 }
 0x748   :  { %3706 = vmatprep.subr.mxu1 %v2690_v53 }
 0x7e4   :  { %v1797_v19 = vpop.f32.mrf.mxu1 }
 0x7e5   :  { %v1877_v18 = vrot.slane %v1797_v19, %v4340_v47 }
 0x7e6   :  { %v3628_v21 = vpop.f32.mrf.mxu1 }
 0x7e7   :  { %v1878_v24 = vmul.f32 %v1877_v18, %v4797_v4  ;;  %v1879_v25 = vmul.f32 %v1877_v18, %v4795_v1  ;;  %v2688_v1 = vld [vmem:[%s5080_s1 + $0x5e8] sm:$0xff]  ;;  %v2687_v4 = vld [vmem:[%s5080_s1 + $0x5e0] sm:$0xff] }
 0x7e8   :  { %v1870_v23 = vpop.f32.mrf.mxu1 }
 0x7e9   :  { %v1883_v27 = vrot.slane %v1870_v23, %v4340_v47 }
 0x7ea   :  { %v3635_v30 = vpop.f32.mrf.mxu1 }
 0x7eb   :  { %v1884_v56 = vadd.f32 %v1883_v27, %v1878_v24  ;;  %v1885_v57 = vadd.f32 %v1883_v27, %v1879_v25 }
 0x7ed   :  { %v1886_v58 = vmax.f32 %v1884_v56, 0.0  ;;  %v1887_v59 = vmax.f32 %v1885_v57, 0.0  ;;  %v2334_v56 = vld [vmem:[%s5084_s2 + $0x3] sm:$0x1] }
 0x7ef   :  { %1888 = vst [vmem:[#allocation2 + $0x1] sm:$0xff] %v1886_v58  ;;  %1889 = vst [vmem:[#allocation2 + $0x11] sm:$0xff] %v1887_v59  ;;  %3668 = vmatprep.mubr.f32.mxu1 %v1886_v58 }
 0x7f0   :  { %3669 = vmatmul.mubr.f32.vlgmr.msra.gmra.mxu1 %v1887_v59  ;;  %v2335_v59 = vld [vmem:[%s5085_s3 + $0x3] sm:$0x1] }
 0x7f1   :  { %3707 = vmatpush3.msra.mxu1 %v2690_v53 }
 0x7f2   :  { %3708 = vmatprep.subr.mxu1 %v2689_v60 }
 0x7f3   :  { %3709 = vmatpush3.msra.mxu1 %v2689_v60 }
 0x7f4   :  { %3710 = vmatprep.subr.mxu1 %v2688_v1 }
 0x7f5   :  { %3711 = vmatpush3.msra.mxu1 %v2688_v1 }
 0x7f6   :  { %v1890_v63 = vld [vmem:[#allocation2] sm:$0xff]  ;;  %v1891_v2 = vld [vmem:[#allocation2 + $0x10] sm:$0xff]  ;;  %3712 = vmatprep.subr.mxu1 %v2687_v4 }
 0x7f7   :  { %v2078_v5 = vld [vmem:[#allocation2 + $0x2] sm:$0xff]  ;;  %3703 = vmatprep.mubr.f32.mxu0 %v1890_v63  ;;  %3713 = vmatpush3.msra.mxu1 %v2687_v4  ;;  %v2079_v45 = vld [vmem:[#allocation2 + $0x12] sm:$0xff] }
 0x7f8   :  { %3738 = vmatprep.mubr.f32.mxu1 %v2078_v5  ;;  %3704 = vmatmul.mubr.f32.vlgmr.msra.gmra.mxu0 %v1891_v2 }
 0x7f9   :  { %3714 = vmatprep.subr.mxu1 %v2686_v61  ;;  %3742 = vmatpush3.msra.mxu0 %v4620_v8 }
 0x7fa   :  { %3715 = vmatpush3.msra.mxu1 %v2686_v61  ;;  %3743 = vmatprep.subr.mxu0 %v3853_v3 }
 0x7fb   :  { %3716 = vmatprep.subr.mxu1 %v2685_v6  ;;  %3744 = vmatpush3.msra.mxu0 %v4630_v10 }
 0x7fc   :  { %3717 = vmatpush3.msra.mxu1 %v2685_v6  ;;  %3745 = vmatprep.subr.mxu0 %v3853_v3 }
 0x7fd   :  { %3718 = vmatprep.subr.mxu1 %v2684_v7  ;;  %3746 = vmatpush3.msra.mxu0 %v4640_v12 }
 0x7fe   :  { %3719 = vmatpush3.msra.mxu1 %v2684_v7  ;;  %3747 = vmatprep.subr.mxu0 %v3853_v3 }
 0x7ff   :  { %3720 = vmatprep.subr.mxu1 %v2683_v34  ;;  %3748 = vmatpush3.msra.mxu0 %v4650_v17 }
 0x800   :  { %3721 = vmatpush3.msra.mxu1 %v2683_v34  ;;  %3749 = vmatprep.subr.mxu0 %v3853_v3 }
 0x801   :  { %3722 = vmatprep.subr.mxu1 %v2682_v35  ;;  %3750 = vmatpush3.msra.mxu0 %v4660_v14 }
 0x802   :  { %3723 = vmatpush3.msra.mxu1 %v2682_v35  ;;  %3751 = vmatprep.subr.mxu0 %v3853_v3 }
 0x803   :  { %3724 = vmatprep.subr.mxu1 %v2681_v38  ;;  %3752 = vmatpush3.msra.mxu0 %v4670_v20 }
 0x804   :  { %3725 = vmatpush3.msra.mxu1 %v2681_v38  ;;  %3753 = vmatprep.subr.mxu0 %v3853_v3 }
 0x805   :  { %3726 = vmatprep.subr.mxu1 %v2680_v39  ;;  %3754 = vmatpush3.msra.mxu0 %v4680_v22 }
 0x806   :  { %3727 = vmatpush3.msra.mxu1 %v2680_v39  ;;  %3755 = vmatprep.subr.mxu0 %v3853_v3 }
 0x807   :  { %3728 = vmatprep.subr.mxu1 %v2679_v40  ;;  %3756 = vmatpush3.msra.mxu0 %v4690_v36 }
 0x808   :  { %3729 = vmatpush3.msra.mxu1 %v2679_v40  ;;  %3757 = vmatprep.subr.mxu0 %v3853_v3 }
 0x809   :  { %3730 = vmatprep.subr.mxu1 %v2678_v41  ;;  %3758 = vmatpush3.msra.mxu0 %v4700_v37 }
 0x80a   :  { %3731 = vmatpush3.msra.mxu1 %v2678_v41  ;;  %3759 = vmatprep.subr.mxu0 %v3853_v3 }
 0x80b   :  { %3732 = vmatprep.subr.mxu1 %v2677_v42  ;;  %3760 = vmatpush3.msra.mxu0 %v4710_v26 }
 0x80c   :  { %3733 = vmatpush3.msra.mxu1 %v2677_v42  ;;  %3761 = vmatprep.subr.mxu0 %v3853_v3 }
 0x80d   :  { %3734 = vmatprep.subr.mxu1 %v2676_v43  ;;  %3762 = vmatpush3.msra.mxu0 %v4720_v28 }
 0x80e   :  { %3735 = vmatpush3.msra.mxu1 %v2676_v43  ;;  %3763 = vmatprep.subr.mxu0 %v3853_v3 }
 0x80f   :  { %3736 = vmatprep.subr.mxu1 %v2675_v44  ;;  %3764 = vmatpush3.msra.mxu0 %v4727_v29 }
 0x810   :  { %3737 = vmatpush3.msra.mxu1 %v2675_v44  ;;  %3765 = vmatprep.subr.mxu0 %v3853_v3 }
 0x811   :  { %3739 = vmatmul.mubr.f32.vlgmr.msra.gmra.mxu1 %v2079_v45  ;;  %3776 = vmatprep.subr.mxu1 %v3853_v3 }
 0x812   :  { %3777 = vmatpush3.msra.mxu1 %v4620_v8  ;;  %3766 = vmatpush3.msra.mxu0 %v4736_v31 }
 0x813   :  { %3778 = vmatprep.subr.mxu1 %v3853_v3  ;;  %3767 = vmatprep.subr.mxu0 %v3853_v3 }
 0x814   :  { %3779 = vmatpush3.msra.mxu1 %v4630_v10  ;;  %3768 = vmatpush3.msra.mxu0 %v4745_v32 }
 0x815   :  { %3780 = vmatprep.subr.mxu1 %v3853_v3  ;;  %3769 = vmatprep.subr.mxu0 %v3853_v3 }
 0x816   :  { %3781 = vmatpush3.msra.mxu1 %v4640_v12  ;;  %3770 = vmatpush3.msra.mxu0 %v4754_v33 }
 0x817   :  { %3782 = vmatprep.subr.mxu1 %v3853_v3  ;;  %3771 = vmatprep.subr.mxu0 %v3853_v3 }
 0x818   :  { %3783 = vmatpush3.msra.mxu1 %v4650_v17  ;;  %3772 = vmatpush3.msra.mxu0 %v4763_v55 }
 0x819   :  { %3784 = vmatprep.subr.mxu1 %v3853_v3  ;;  %3773 = vmatprep.mubr.msk.f32.mxu0 %vm3854_vm0, %v3853_v3 }
 0x81a   :  { %3785 = vmatpush3.msra.mxu1 %v4660_v14  ;;  %3808 = vmatprep.mubr.msk.f32.mxu1 %vm3854_vm0, %v3853_v3 }
 0x81b   :  { %3786 = vmatprep.subr.mxu1 %v3853_v3  ;;  %3811 = vmatprep.subr.mxu0 %v3853_v3 }
 0x81c   :  { %3787 = vmatpush3.msra.mxu1 %v4670_v20 }
 0x81d   :  { %3788 = vmatprep.subr.mxu1 %v3853_v3 }
 0x81e   :  { %3789 = vmatpush3.msra.mxu1 %v4680_v22 }
 0x81f   :  { %3790 = vmatprep.subr.mxu1 %v3853_v3 }
 0x820   :  { %3791 = vmatpush3.msra.mxu1 %v4690_v36 }
 0x821   :  { %3792 = vmatprep.subr.mxu1 %v3853_v3 }
 0x822   :  { %3793 = vmatpush3.msra.mxu1 %v4700_v37 }
 0x823   :  { %3794 = vmatprep.subr.mxu1 %v3853_v3 }
 0x824   :  { %3795 = vmatpush3.msra.mxu1 %v4710_v26 }
 0x825   :  { %3796 = vmatprep.subr.mxu1 %v3853_v3 }
 0x826   :  { %3797 = vmatpush3.msra.mxu1 %v4720_v28 }
 0x827   :  { %3798 = vmatprep.subr.mxu1 %v3853_v3 }
 0x828   :  { %3799 = vmatpush3.msra.mxu1 %v4727_v29 }
 0x829   :  { %3800 = vmatprep.subr.mxu1 %v3853_v3 }
 0x82a   :  { %3801 = vmatpush3.msra.mxu1 %v4736_v31 }
 0x82b   :  { %3802 = vmatprep.subr.mxu1 %v3853_v3 }
 0x82c   :  { %3803 = vmatpush3.msra.mxu1 %v4745_v32 }
 0x82d   :  { %3804 = vmatprep.subr.mxu1 %v3853_v3 }
 0x82e   :  { %3805 = vmatpush3.msra.mxu1 %v4754_v33 }
 0x82f   :  { %3806 = vmatprep.subr.mxu1 %v3853_v3 }
 0x830   :  { %3807 = vmatpush3.msra.mxu1 %v4763_v55 }
 0x8b0   :  { %v3670_v8 = vpop.f32.mrf.mxu1 }
 0x8b2   :  { %v1994_v12 = vpop.f32.mrf.mxu1 }
 0x8b8   :  { %v3705_v10 = vpop.f32.mrf.mxu0 }
 0x8b9   :  { %v2075_v14 = vadd.f32 %v3705_v10, %v3670_v8 }
 0x8ba   :  { %v2069_v17 = vpop.f32.mrf.mxu0 }
 0x8bb   :  { %v2070_v22 = vadd.f32 %v2069_v17, %v1994_v12 }
 0x8d1   :  { %v3740_v20 = vpop.f32.mrf.mxu1 }
 0x8d2   :  { %v2173_v36 = vadd.f32 %v3740_v20, %v2075_v14 }
 0x8d3   :  { %v2163_v37 = vpop.f32.mrf.mxu1 }
 0x8d4   :  { %v2172_v26 = vadd.f32 %v2163_v37, %v2070_v22  ;;  %v2182_v28 = vmul.f32 %v2173_v36, %v2173_v36 }
 0x8d6   :  { %v2174_v29 = vadd.f32 %v2173_v36, %v2172_v26  ;;  %v2181_v31 = vmul.f32 %v2172_v26, %v2172_v26 }
 0x8d8   :  { %v2175_v32 = vrot.slane %v2174_v29, 4  ;;  %v2183_v46 = vadd.f32 %v2182_v28, %v2181_v31 }
 0x8da   :  { %v2176_v33 = vadd.f32 %v2175_v32, %v2174_v29  ;;  %v2184_v48 = vrot.slane %v2183_v46, 4 }
 0x8dc   :  { %v2177_v62 = vrot.slane %v2176_v33, 2  ;;  %v2185_v0 = vadd.f32 %v2184_v48, %v2183_v46 }
 0x8de   :  { %v2178_v55 = vadd.f32 %v2177_v62, %v2176_v33  ;;  %v2186_v51 = vrot.slane %v2185_v0, 2 }
 0x8e0   :  { %v2179_v52 = vrot.slane %v2178_v55, 1  ;;  %v2187_v53 = vadd.f32 %v2186_v51, %v2185_v0 }
 0x8e2   :  { %v2180_v54 = vadd.f32 %v2179_v52, %v2178_v55  ;;  %v2188_v9 = vrot.slane %v2187_v53, 1 }
 0x8e4   :  { %3774 = vmatmul.mubr.f32.vlgmr.msra.gmra.mxu0 %v2180_v54  ;;  %v2189_v11 = vadd.f32 %v2188_v9, %v2187_v53 }
 0x8e5   :  { %3812 = vmatpush3.msra.mxu0 %v4808_v15  ;;  %3815 = vmatprep.mubr.msk.f32.mxu0 %vm3854_vm0, %v3853_v3 }
 0x8e6   :  { %3809 = vmatmul.mubr.f32.vlgmr.msra.gmra.mxu1 %v2189_v11  ;;  %3813 = vmatprep.subr.mxu0 %v3853_v3 }
 0x8e7   :  { %3814 = vmatpush3.msra.mxu0 %v4817_v16 }
 0x8e8   :  { %3818 = vmatprep.subr.mxu0 %v3853_v3 }
 0x9a4   :  { %v2256_v13 = vpop.f32.mrf.mxu0 }
 0x9a5   :  { %v2260_v19 = vmul.f32 0.0078125, %v2256_v13 }
 0x9a6   :  { %v3775_v18 = vpop.f32.mrf.mxu0  ;;  %v2327_v21 = vpop.f32.mrf.mxu1 }
 0x9a7   :  { %v2332_v23 = vmul.f32 %v2260_v19, %v2260_v19  ;;  %v2331_v24 = vmul.f32 0.0078125, %v2327_v21 }
 0x9a8   :  { %v3810_v25 = vpop.f32.mrf.mxu1 }
 0x9a9   :  { %v2333_v27 = vsub.f32 %v2331_v24, %v2332_v23 }
 0x9ab   :  { %v2336_v30 = vadd.f32 1e-05, %v2333_v27 }
 0x9ad   :  { %3833 = vrsqrt.f32 %v2336_v30 }
 0x9ba   :  { %v3834_v57 = vpop.eup %3833 }
 0x9bb   :  { %v2338_v58 = vmul.f32 %v3834_v57, %v2334_v56 }
 0x9bd   :  { %3816 = vmatmul.mubr.msk.f32.vlgmr.msra.gmra.mxu0 %vm499_vm1, %v2338_v58  ;;  %v2339_v60 = vmul.f32 %v2338_v58, %v2260_v19 }
 0x9be   :  { %3819 = vmatpush3.msra.mxu0 %v4808_v15  ;;  %3822 = vmatprep.mubr.msk.f32.mxu0 %vm3854_vm0, %v3853_v3 }
 0x9bf   :  { %3820 = vmatprep.subr.mxu0 %v3853_v3  ;;  %v2340_v1 = vsub.f32 %v2335_v59, %v2339_v60 }
 0x9c0   :  { %3821 = vmatpush3.msra.mxu0 %v4817_v16 }
 0x9c1   :  { %3823 = vmatmul.mubr.msk.f32.vlgmr.msra.gmra.mxu0 %vm499_vm1, %v2340_v1 }
 0xa7d   :  { %v2410_v4 = vpop.f32.mrf.mxu0 }
 0xa7e   :  { %v2490_v61 = vrot.slane %v2410_v4, %v4340_v47 }
 0xa7f   :  { %v3817_v63 = vpop.f32.mrf.mxu0 }
 0xa80   :  { %v2491_v5 = vmul.f32 %v2490_v61, %v2172_v26  ;;  %v2492_v6 = vmul.f32 %v2490_v61, %v2173_v36 }
 0xa81   :  { %v2483_v2 = vpop.f32.mrf.mxu0 }
 0xa82   :  { %v2496_v7 = vrot.slane %v2483_v2, %v4340_v47 }
 0xa83   :  { %v3824_v15 = vpop.f32.mrf.mxu0 }
 0xa84   :  { %v2497_v34 = vadd.f32 %v2496_v7, %v2491_v5  ;;  %v2498_v35 = vadd.f32 %v2496_v7, %v2492_v6 }
 0xa86   :  { %v2499_v38 = vadd.f32 %v2497_v34, %v4594_v49  ;;  %v2500_v3 = vadd.f32 %v2498_v35, %v4596_v50 }
 0xa88   :  { %v2501_v39 = vmax.f32 %v2499_v38, 0.0  ;;  %v2502_v16 = vmax.f32 %v2500_v3, 0.0 }
 0xa8a   :  { %2503 = vst [vmem:[%s5086_s6] sm:$0xff] %v2501_v39  ;;  %2504 = vst [vmem:[%s5086_s6 + $0x8] sm:$0xff] %v2502_v16 }

</bundles_post_ra>
